<compile_context>
chip_gen: v6e
topology: v6e:2x2x1
jax: 0.10.0
libtpu: 0.0.40
codegen_flags: <defaults>
</compile_context>

<pallas_src>
import functools

import jax
import jax.numpy as jnp
from jax.experimental import pallas as pl
from jax.experimental.pallas import tpu as pltpu


def _bottleneck_kernel(x_ref, s1_ref, b1_ref, w1_ref, s2_ref, b2_ref, w2p_ref,
                       o_ref, zw_ref, acc_ref, *, fuse_passthrough):
    # x_ref:   (H, W, Cin)           one image (batch squeezed by BlockSpec)
    # s1/b1:   (1, Cin)              folded BN1 scale / shift (f32)
    # w1_ref:  (Cin, Cmid)           1x1-conv weight, transposed, bf16
    # s2/b2:   (1, Cmid)             folded BN2 scale / shift (f32)
    # w2p_ref: (3, 3*Cmid, Cg)       3x3 weights, [kh, kw*Cmid + c, g], bf16
    # o_ref:   (H, W, Cin+Cg) or (H, W, Cg) depending on fuse_passthrough
    # zw_ref:  (H, W, 3*Cmid) f32    width-packed im2col slab (VMEM scratch)
    # acc_ref: (H*W, Cg)      f32    conv2 accumulator (VMEM scratch)
    H, W, Cin = x_ref.shape
    Cmid = w1_ref.shape[1]
    Cg = w2p_ref.shape[2]
    HW = H * W

    x = x_ref[...]                                    # native dtype (f32/bf16)
    xf = x.astype(jnp.float32)

    # ---- BN1 (inference form) + ReLU, f32 on the VPU -----------------------
    s1 = s1_ref[...].reshape(1, 1, Cin)
    b1 = b1_ref[...].reshape(1, 1, Cin)
    y = jnp.maximum(xf * s1 + b1, 0.0)                # (H, W, Cin)

    # ---- conv1 (1x1) == channel matmul on the MXU (bf16 in, f32 acc) -------
    # (H,W,Cin)->(H*W,Cin) is layout-preserving (W is a multiple of 8).
    y1 = jnp.dot(y.reshape(HW, Cin).astype(jnp.bfloat16), w1_ref[...],
                 preferred_element_type=jnp.float32)  # (H*W, Cmid)

    # ---- BN2 + ReLU ---------------------------------------------------------
    z = jnp.maximum(y1 * s2_ref[...] + b2_ref[...], 0.0)   # (H*W, Cmid) f32
    z3 = z.reshape(H, W, Cmid)

    # ---- width-packed im2col slab: zw[h, w, kw*Cmid + c] = z[h, w+kw-1, c] --
    zw_ref[:, :, Cmid:2 * Cmid] = z3                        # kw = 1 (center)
    zw_ref[:, 1:, :Cmid] = z3[:, :W - 1, :]                 # kw = 0 (left)
    zw_ref[:, :1, :Cmid] = jnp.zeros((H, 1, Cmid), zw_ref.dtype)
    zw_ref[:, :W - 1, 2 * Cmid:] = z3[:, 1:, :]             # kw = 2 (right)
    zw_ref[:, W - 1:, 2 * Cmid:] = jnp.zeros((H, 1, Cmid), zw_ref.dtype)

    # Single cast to bf16; (H,W,3*Cmid)->(H*W,3*Cmid) is layout-preserving.
    zw = zw_ref[...].astype(jnp.bfloat16).reshape(HW, 3 * Cmid)

    # ---- conv2 (3x3, pad=1): height taps = aligned row-range matmuls -------
    # out[p] = zw[p] @ W_kh1 + zw[p - W] @ W_kh0 + zw[p + W] @ W_kh2
    acc_ref[...] = jnp.dot(zw, w2p_ref[1],
                           preferred_element_type=jnp.float32)
    acc_ref[W:, :] += jnp.dot(zw[:HW - W, :], w2p_ref[0],
                              preferred_element_type=jnp.float32)
    acc_ref[:HW - W, :] += jnp.dot(zw[W:, :], w2p_ref[2],
                                   preferred_element_type=jnp.float32)

    out2 = acc_ref[...].reshape(H, W, Cg).astype(o_ref.dtype)

    # ---- output: slice stores (no jnp.concatenate lane shuffle) ------------
    if fuse_passthrough:
        o_ref[:, :, :Cin] = x.astype(o_ref.dtype)     # PyTorch-compat concat
        o_ref[:, :, Cin:] = out2
    else:
        o_ref[...] = out2                             # new channels only


def _fold_bn(gamma, beta, mean, var, eps):
    s = (gamma.astype(jnp.float32) /
         jnp.sqrt(var.astype(jnp.float32) + eps))
    b = beta.astype(jnp.float32) - mean.astype(jnp.float32) * s
    return s, b


def _prepare_params(gamma1, beta1, mean1, var1, conv1_w,
                    gamma2, beta2, mean2, var2, conv2_w, eps):
    Cmid, Cin = conv1_w.shape[0], conv1_w.shape[1]
    Cg = conv2_w.shape[0]
    s1, b1 = _fold_bn(gamma1, beta1, mean1, var1, eps)
    s2, b2 = _fold_bn(gamma2, beta2, mean2, var2, eps)
    # 1x1 weight -> (Cin, Cmid), bf16 for the MXU.
    w1 = conv1_w.reshape(Cmid, Cin).T.astype(jnp.bfloat16)
    # 3x3 weight (Cg, Cmid, kh, kw) -> (kh, kw*Cmid + c, g), bf16.
    w2p = jnp.transpose(conv2_w, (2, 3, 1, 0)).reshape(3, 3 * Cmid, Cg)
    w2p = w2p.astype(jnp.bfloat16)
    return (s1.reshape(1, Cin), b1.reshape(1, Cin), w1,
            s2.reshape(1, Cmid), b2.reshape(1, Cmid), w2p)


def _call_kernel(x_nhwc, params, *, fuse_passthrough):
    s1, b1, w1, s2, b2, w2p = params
    N, H, W, Cin = x_nhwc.shape
    Cmid = w1.shape[1]
    Cg = w2p.shape[2]
    Cout = Cin + Cg if fuse_passthrough else Cg

    kernel = functools.partial(_bottleneck_kernel,
                               fuse_passthrough=fuse_passthrough)
    return pl.pallas_call(
        kernel,
        out_shape=jax.ShapeDtypeStruct((N, H, W, Cout), x_nhwc.dtype),
        grid_spec=pltpu.PrefetchScalarGridSpec(
            num_scalar_prefetch=0,
            grid=(N,),
            in_specs=[
                pl.BlockSpec((pl.Squeezed(), H, W, Cin), lambda n: (n, 0, 0, 0)),
                pl.BlockSpec((1, Cin), lambda n: (0, 0)),
                pl.BlockSpec((1, Cin), lambda n: (0, 0)),
                pl.BlockSpec((Cin, Cmid), lambda n: (0, 0)),
                pl.BlockSpec((1, Cmid), lambda n: (0, 0)),
                pl.BlockSpec((1, Cmid), lambda n: (0, 0)),
                pl.BlockSpec((3, 3 * Cmid, Cg), lambda n: (0, 0, 0)),
            ],
            out_specs=pl.BlockSpec((pl.Squeezed(), H, W, Cout),
                                   lambda n: (n, 0, 0, 0)),
            scratch_shapes=[
                pltpu.VMEM((H, W, 3 * Cmid), jnp.float32),   # im2col slab
                pltpu.VMEM((H * W, Cg), jnp.float32),        # conv2 acc
            ],
        ),
        compiler_params=pltpu.CompilerParams(
            dimension_semantics=("parallel",),
            vmem_limit_bytes=48 * 1024 * 1024,   # fits v7x (64 MiB/TC)
        ),
    )(x_nhwc, s1, b1, w1, s2, b2, w2p)


def bottleneck_new_channels_nhwc(x_nhwc,
                                 gamma1, beta1, mean1, var1, conv1_w,
                                 gamma2, beta2, mean2, var2, conv2_w,
                                 eps=1e-5):
    """Pipeline path: returns only the Cg new channels (N,H,W,Cg).

    A DenseNet pipeline that owns the growing concat buffer should use this
    and place the result itself, avoiding any re-write of the x channels.
    """
    params = _prepare_params(gamma1, beta1, mean1, var1, conv1_w,
                             gamma2, beta2, mean2, var2, conv2_w, eps)
    return _call_kernel(x_nhwc, params, fuse_passthrough=False)


def bottleneck_forward_nhwc(x_nhwc,
                            gamma1, beta1, mean1, var1, conv1_w,
                            gamma2, beta2, mean2, var2, conv2_w,
                            eps=1e-5):
    """NHWC entry point matching PyTorch semantics: (N,H,W,Cin+Cg)."""
    params = _prepare_params(gamma1, beta1, mean1, var1, conv1_w,
                             gamma2, beta2, mean2, var2, conv2_w, eps)
    return _call_kernel(x_nhwc, params, fuse_passthrough=True)


def bottleneck_forward(x_nchw,
                       gamma1, beta1, mean1, var1, conv1_w,
                       gamma2, beta2, mean2, var2, conv2_w,
                       eps=1e-5):
    """NCHW wrapper matching the PyTorch module convention."""
    x_nhwc = jnp.transpose(x_nchw, (0, 2, 3, 1))
    out_nhwc = bottleneck_forward_nhwc(
        x_nhwc, gamma1, beta1, mean1, var1, conv1_w,
        gamma2, beta2, mean2, var2, conv2_w, eps=eps)
    return jnp.transpose(out_nhwc, (0, 3, 1, 2))


def _reference(x, gamma1, beta1, mean1, var1, conv1_w,
               gamma2, beta2, mean2, var2, conv2_w, eps=1e-5):
    """Pure-JAX f32 reference (NCHW), inference-form BatchNorm."""
    def bn(t, g, b, m, v):
        s = g / jnp.sqrt(v + eps)
        return t * s.reshape(1, -1, 1, 1) + (b - m * s).reshape(1, -1, 1, 1)

    y = jnp.maximum(bn(x, gamma1, beta1, mean1, var1), 0.0)
    y1 = jax.lax.conv_general_dilated(
        y, conv1_w, (1, 1), 'VALID', dimension_numbers=('NCHW', 'OIHW', 'NCHW'))
    z = jnp.maximum(bn(y1, gamma2, beta2, mean2, var2), 0.0)
    out2 = jax.lax.conv_general_dilated(
        z, conv2_w, (1, 1), ((1, 1), (1, 1)),
        dimension_numbers=('NCHW', 'OIHW', 'NCHW'))
    return jnp.concatenate([x, out2], axis=1)


if __name__ == "__main__":
    key = jax.random.PRNGKey(0)
    ks = jax.random.split(key, 11)

    N, Cin, H, W = 2, 4, 16, 16
    growth = 8
    Cmid = 4 * growth      # interChannels = 32
    Cg = growth            # growthRate

    x = jax.random.normal(ks[0], (N, Cin, H, W), dtype=jnp.float32)
    gamma1 = jax.random.uniform(ks[1], (Cin,), minval=0.5, maxval=1.5)
    beta1 = jax.random.normal(ks[2], (Cin,)) * 0.1
    mean1 = jax.random.normal(ks[3], (Cin,)) * 0.1
    var1 = jax.random.uniform(ks[4], (Cin,), minval=0.5, maxval=1.5)
    conv1_w = jax.random.normal(ks[5], (Cmid, Cin, 1, 1)) * 0.1
    gamma2 = jax.random.uniform(ks[6], (Cmid,), minval=0.5, maxval=1.5)
    beta2 = jax.random.normal(ks[7], (Cmid,)) * 0.1
    mean2 = jax.random.normal(ks[8], (Cmid,)) * 0.1
    var2 = jax.random.uniform(ks[9], (Cmid,), minval=0.5, maxval=1.5)
    conv2_w = jax.random.normal(ks[10], (Cg, Cmid, 3, 3)) * 0.05

    ref = _reference(x, gamma1, beta1, mean1, var1, conv1_w,
                     gamma2, beta2, mean2, var2, conv2_w)

    # PyTorch-compat path (fused concat via slice stores).
    out = bottleneck_forward(x, gamma1, beta1, mean1, var1, conv1_w,
                             gamma2, beta2, mean2, var2, conv2_w)
    out = jax.block_until_ready(out)
    assert out.shape == (N, Cin + Cg, H, W), out.shape
    # bf16 MXU inputs vs f32 reference -> loosened tolerance.
    max_err = float(jnp.max(jnp.abs(out - ref)))
    assert max_err < 5e-2, f"compat path mismatch: max_err={max_err}"

    # Pipeline path (new channels only, no pass-through x write).
    x_nhwc = jnp.transpose(x, (0, 2, 3, 1))
    new_nhwc = bottleneck_new_channels_nhwc(
        x_nhwc, gamma1, beta1, mean1, var1, conv1_w,
        gamma2, beta2, mean2, var2, conv2_w)
    new_nhwc = jax.block_until_ready(new_nhwc)
    ref_new_nhwc = jnp.transpose(ref[:, Cin:, :, :], (0, 2, 3, 1))
    max_err2 = float(jnp.max(jnp.abs(new_nhwc - ref_new_nhwc)))
    assert max_err2 < 5e-2, f"pipeline path mismatch: max_err={max_err2}"

    print("KERNEL_OK")
</pallas_src>

<mosaic_0001>
module attributes {stable_mosaic.version = 11 : i64} {
  func.func @_bottleneck_kernel(%arg0: i32, %arg1: memref<1x16x16x4xf32, #tpu.memory_space<vmem>>, %arg2: memref<1x4xf32, #tpu.memory_space<vmem>>, %arg3: memref<1x4xf32, #tpu.memory_space<vmem>>, %arg4: memref<4x32xbf16, #tpu.memory_space<vmem>>, %arg5: memref<1x32xf32, #tpu.memory_space<vmem>>, %arg6: memref<1x32xf32, #tpu.memory_space<vmem>>, %arg7: memref<3x96x8xbf16, #tpu.memory_space<vmem>>, %arg8: memref<1x16x16x12xf32, #tpu.memory_space<vmem>>, %arg9: memref<16x16x96xf32, #tpu.memory_space<vmem>>, %arg10: memref<256x8xf32, #tpu.memory_space<vmem>>) attributes {dimension_semantics = [#tpu.dimension_semantics<parallel>], iteration_bounds = array<i64: 2>, scalar_prefetch = 0 : i64, scratch_operands = 2 : i64, tpu.core_type = #tpu.core_type<tc>, window_params = [{transform_indices = @transform_0, window_bounds = array<i64: 1, 16, 16, 4>}, {pipeline_mode = #tpu.pipeline_mode<synchronous>, transform_indices = @transform_1, window_bounds = array<i64: 1, 4>}, {pipeline_mode = #tpu.pipeline_mode<synchronous>, transform_indices = @transform_2, window_bounds = array<i64: 1, 4>}, {pipeline_mode = #tpu.pipeline_mode<synchronous>, transform_indices = @transform_3, window_bounds = array<i64: 4, 32>}, {pipeline_mode = #tpu.pipeline_mode<synchronous>, transform_indices = @transform_4, window_bounds = array<i64: 1, 32>}, {pipeline_mode = #tpu.pipeline_mode<synchronous>, transform_indices = @transform_5, window_bounds = array<i64: 1, 32>}, {pipeline_mode = #tpu.pipeline_mode<synchronous>, transform_indices = @transform_6, window_bounds = array<i64: 3, 96, 8>}, {transform_indices = @transform_7, window_bounds = array<i64: 1, 16, 16, 12>}]} {
    %c0 = arith.constant 0 : index
    %c0_0 = arith.constant 0 : index
    %c0_1 = arith.constant 0 : index
    %c0_2 = arith.constant 0 : index
    %0 = vector.load %arg1[%c0, %c0_0, %c0_1, %c0_2] : memref<1x16x16x4xf32, #tpu.memory_space<vmem>>, vector<1x16x16x4xf32>
    %1 = vector.shape_cast %0 : vector<1x16x16x4xf32> to vector<16x16x4xf32>
    %c0_3 = arith.constant 0 : index
    %c0_4 = arith.constant 0 : index
    %2 = vector.load %arg2[%c0_3, %c0_4] : memref<1x4xf32, #tpu.memory_space<vmem>>, vector<1x4xf32>
    %3 = vector.shape_cast %2 : vector<1x4xf32> to vector<1x1x4xf32>
    %c0_5 = arith.constant 0 : index
    %c0_6 = arith.constant 0 : index
    %4 = vector.load %arg3[%c0_5, %c0_6] : memref<1x4xf32, #tpu.memory_space<vmem>>, vector<1x4xf32>
    %5 = vector.shape_cast %4 : vector<1x4xf32> to vector<1x1x4xf32>
    %6 = vector.broadcast %3 : vector<1x1x4xf32> to vector<16x16x4xf32>
    %7 = arith.mulf %1, %6 : vector<16x16x4xf32>
    %8 = vector.broadcast %5 : vector<1x1x4xf32> to vector<16x16x4xf32>
    %9 = arith.addf %7, %8 : vector<16x16x4xf32>
    %cst = arith.constant 0.000000e+00 : f32
    %10 = vector.broadcast %cst : f32 to vector<16x16x4xf32>
    %11 = arith.maximumf %9, %10 : vector<16x16x4xf32>
    %12 = vector.shape_cast %11 : vector<16x16x4xf32> to vector<256x4xf32>
    %13 = arith.truncf %12 : vector<256x4xf32> to vector<256x4xbf16>
    %c0_7 = arith.constant 0 : index
    %c0_8 = arith.constant 0 : index
    %14 = vector.load %arg4[%c0_7, %c0_8] : memref<4x32xbf16, #tpu.memory_space<vmem>>, vector<4x32xbf16>
    %cst_9 = arith.constant dense<0.000000e+00> : vector<256x32xf32>
    %15 = tpu.matmul %13, %14, %cst_9 {dimension_numbers = #tpu.dot_dimension_numbers<[1], [0], [0], [1], [0, 0, 1, 1], [], []>} : vector<256x4xbf16>, vector<4x32xbf16>, vector<256x32xf32> -> vector<256x32xf32>
    %c0_10 = arith.constant 0 : index
    %c0_11 = arith.constant 0 : index
    %16 = vector.load %arg5[%c0_10, %c0_11] : memref<1x32xf32, #tpu.memory_space<vmem>>, vector<1x32xf32>
    %17 = vector.broadcast %16 : vector<1x32xf32> to vector<256x32xf32>
    %18 = arith.mulf %15, %17 : vector<256x32xf32>
    %c0_12 = arith.constant 0 : index
    %c0_13 = arith.constant 0 : index
    %19 = vector.load %arg6[%c0_12, %c0_13] : memref<1x32xf32, #tpu.memory_space<vmem>>, vector<1x32xf32>
    %20 = vector.broadcast %19 : vector<1x32xf32> to vector<256x32xf32>
    %21 = arith.addf %18, %20 : vector<256x32xf32>
    %cst_14 = arith.constant 0.000000e+00 : f32
    %22 = vector.broadcast %cst_14 : f32 to vector<256x32xf32>
    %23 = arith.maximumf %21, %22 : vector<256x32xf32>
    %24 = vector.shape_cast %23 : vector<256x32xf32> to vector<16x16x32xf32>
    %c0_15 = arith.constant 0 : index
    %c0_16 = arith.constant 0 : index
    %c32 = arith.constant 32 : index
    %25 = vector.load %arg9[%c0_15, %c0_16, %c32] : memref<16x16x96xf32, #tpu.memory_space<vmem>>, vector<16x16x32xf32>
    tpu.vector_store %arg9[%c0_15, %c0_16, %c32], %24 {strides = array<i32>} : memref<16x16x96xf32, #tpu.memory_space<vmem>>, vector<16x16x32xf32>,
    %26 = vector.extract_strided_slice %24 {offsets = [0, 0, 0], sizes = [16, 15, 32], strides = [1, 1, 1]} : vector<16x16x32xf32> to vector<16x15x32xf32>
    %c0_17 = arith.constant 0 : index
    %c1 = arith.constant 1 : index
    %c0_18 = arith.constant 0 : index
    %27 = vector.load %arg9[%c0_17, %c1, %c0_18] : memref<16x16x96xf32, #tpu.memory_space<vmem>>, vector<16x15x32xf32>
    tpu.vector_store %arg9[%c0_17, %c1, %c0_18], %26 {strides = array<i32>} : memref<16x16x96xf32, #tpu.memory_space<vmem>>, vector<16x15x32xf32>,
    %cst_19 = arith.constant 0.000000e+00 : f32
    %28 = vector.broadcast %cst_19 : f32 to vector<16x1x32xf32>
    %c0_20 = arith.constant 0 : index
    %c0_21 = arith.constant 0 : index
    %c0_22 = arith.constant 0 : index
    %29 = vector.load %arg9[%c0_20, %c0_21, %c0_22] : memref<16x16x96xf32, #tpu.memory_space<vmem>>, vector<16x1x32xf32>
    tpu.vector_store %arg9[%c0_20, %c0_21, %c0_22], %28 {strides = array<i32>} : memref<16x16x96xf32, #tpu.memory_space<vmem>>, vector<16x1x32xf32>,
    %30 = vector.extract_strided_slice %24 {offsets = [0, 1, 0], sizes = [16, 15, 32], strides = [1, 1, 1]} : vector<16x16x32xf32> to vector<16x15x32xf32>
    %c0_23 = arith.constant 0 : index
    %c0_24 = arith.constant 0 : index
    %c64 = arith.constant 64 : index
    %31 = vector.load %arg9[%c0_23, %c0_24, %c64] : memref<16x16x96xf32, #tpu.memory_space<vmem>>, vector<16x15x32xf32>
    tpu.vector_store %arg9[%c0_23, %c0_24, %c64], %30 {strides = array<i32>} : memref<16x16x96xf32, #tpu.memory_space<vmem>>, vector<16x15x32xf32>,
    %cst_25 = arith.constant 0.000000e+00 : f32
    %32 = vector.broadcast %cst_25 : f32 to vector<16x1x32xf32>
    %c0_26 = arith.constant 0 : index
    %c15 = arith.constant 15 : index
    %c64_27 = arith.constant 64 : index
    %33 = vector.load %arg9[%c0_26, %c15, %c64_27] : memref<16x16x96xf32, #tpu.memory_space<vmem>>, vector<16x1x32xf32>
    tpu.vector_store %arg9[%c0_26, %c15, %c64_27], %32 {strides = array<i32>} : memref<16x16x96xf32, #tpu.memory_space<vmem>>, vector<16x1x32xf32>,
    %c0_28 = arith.constant 0 : index
    %c0_29 = arith.constant 0 : index
    %c0_30 = arith.constant 0 : index
    %34 = vector.load %arg9[%c0_28, %c0_29, %c0_30] : memref<16x16x96xf32, #tpu.memory_space<vmem>>, vector<16x16x96xf32>
    %35 = arith.truncf %34 : vector<16x16x96xf32> to vector<16x16x96xbf16>
    %36 = vector.shape_cast %35 : vector<16x16x96xbf16> to vector<256x96xbf16>
    %c1_31 = arith.constant 1 : index
    %c0_32 = arith.constant 0 : index
    %c0_33 = arith.constant 0 : index
    %37 = vector.load %arg7[%c1_31, %c0_32, %c0_33] : memref<3x96x8xbf16, #tpu.memory_space<vmem>>, vector<1x96x8xbf16>
    %38 = vector.shape_cast %37 : vector<1x96x8xbf16> to vector<96x8xbf16>
    %cst_34 = arith.constant dense<0.000000e+00> : vector<256x8xf32>
    %39 = tpu.matmul %36, %38, %cst_34 {dimension_numbers = #tpu.dot_dimension_numbers<[1], [0], [0], [1], [0, 0, 1, 1], [], []>} : vector<256x96xbf16>, vector<96x8xbf16>, vector<256x8xf32> -> vector<256x8xf32>
    %c0_35 = arith.constant 0 : index
    %c0_36 = arith.constant 0 : index
    %40 = vector.load %arg10[%c0_35, %c0_36] : memref<256x8xf32, #tpu.memory_space<vmem>>, vector<256x8xf32>
    tpu.vector_store %arg10[%c0_35, %c0_36], %39 {strides = array<i32>} : memref<256x8xf32, #tpu.memory_space<vmem>>, vector<256x8xf32>,
    %c16 = arith.constant 16 : index
    %c0_37 = arith.constant 0 : index
    %41 = vector.load %arg10[%c16, %c0_37] : memref<256x8xf32, #tpu.memory_space<vmem>>, vector<240x8xf32>
    %42 = vector.extract_strided_slice %36 {offsets = [0, 0], sizes = [240, 96], strides = [1, 1]} : vector<256x96xbf16> to vector<240x96xbf16>
    %c0_38 = arith.constant 0 : index
    %c0_39 = arith.constant 0 : index
    %c0_40 = arith.constant 0 : index
    %43 = vector.load %arg7[%c0_38, %c0_39, %c0_40] : memref<3x96x8xbf16, #tpu.memory_space<vmem>>, vector<1x96x8xbf16>
    %44 = vector.shape_cast %43 : vector<1x96x8xbf16> to vector<96x8xbf16>
    %cst_41 = arith.constant dense<0.000000e+00> : vector<240x8xf32>
    %45 = tpu.matmul %42, %44, %cst_41 {dimension_numbers = #tpu.dot_dimension_numbers<[1], [0], [0], [1], [0, 0, 1, 1], [], []>} : vector<240x96xbf16>, vector<96x8xbf16>, vector<240x8xf32> -> vector<240x8xf32>
    %46 = arith.addf %41, %45 : vector<240x8xf32>
    %c16_42 = arith.constant 16 : index
    %c0_43 = arith.constant 0 : index
    %47 = vector.load %arg10[%c16_42, %c0_43] : memref<256x8xf32, #tpu.memory_space<vmem>>, vector<240x8xf32>
    tpu.vector_store %arg10[%c16_42, %c0_43], %46 {strides = array<i32>} : memref<256x8xf32, #tpu.memory_space<vmem>>, vector<240x8xf32>,
    %c0_44 = arith.constant 0 : index
    %c0_45 = arith.constant 0 : index
    %48 = vector.load %arg10[%c0_44, %c0_45] : memref<256x8xf32, #tpu.memory_space<vmem>>, vector<240x8xf32>
    %49 = vector.extract_strided_slice %36 {offsets = [16, 0], sizes = [240, 96], strides = [1, 1]} : vector<256x96xbf16> to vector<240x96xbf16>
    %c2 = arith.constant 2 : index
    %c0_46 = arith.constant 0 : index
    %c0_47 = arith.constant 0 : index
    %50 = vector.load %arg7[%c2, %c0_46, %c0_47] : memref<3x96x8xbf16, #tpu.memory_space<vmem>>, vector<1x96x8xbf16>
    %51 = vector.shape_cast %50 : vector<1x96x8xbf16> to vector<96x8xbf16>
    %cst_48 = arith.constant dense<0.000000e+00> : vector<240x8xf32>
    %52 = tpu.matmul %49, %51, %cst_48 {dimension_numbers = #tpu.dot_dimension_numbers<[1], [0], [0], [1], [0, 0, 1, 1], [], []>} : vector<240x96xbf16>, vector<96x8xbf16>, vector<240x8xf32> -> vector<240x8xf32>
    %53 = arith.addf %48, %52 : vector<240x8xf32>
    %c0_49 = arith.constant 0 : index
    %c0_50 = arith.constant 0 : index
    %54 = vector.load %arg10[%c0_49, %c0_50] : memref<256x8xf32, #tpu.memory_space<vmem>>, vector<240x8xf32>
    tpu.vector_store %arg10[%c0_49, %c0_50], %53 {strides = array<i32>} : memref<256x8xf32, #tpu.memory_space<vmem>>, vector<240x8xf32>,
    %c0_51 = arith.constant 0 : index
    %c0_52 = arith.constant 0 : index
    %55 = vector.load %arg10[%c0_51, %c0_52] : memref<256x8xf32, #tpu.memory_space<vmem>>, vector<256x8xf32>
    %56 = vector.shape_cast %55 : vector<256x8xf32> to vector<16x16x8xf32>
    %c0_53 = arith.constant 0 : index
    %c0_54 = arith.constant 0 : index
    %c0_55 = arith.constant 0 : index
    %c0_56 = arith.constant 0 : index
    %57 = vector.load %arg8[%c0_53, %c0_54, %c0_55, %c0_56] : memref<1x16x16x12xf32, #tpu.memory_space<vmem>>, vector<1x16x16x4xf32>
    %58 = vector.shape_cast %57 : vector<1x16x16x4xf32> to vector<16x16x4xf32>
    %59 = vector.shape_cast %1 : vector<16x16x4xf32> to vector<1x16x16x4xf32>
    tpu.vector_store %arg8[%c0_53, %c0_54, %c0_55, %c0_56], %59 {strides = array<i32>} : memref<1x16x16x12xf32, #tpu.memory_space<vmem>>, vector<1x16x16x4xf32>,
    %c0_57 = arith.constant 0 : index
    %c0_58 = arith.constant 0 : index
    %c0_59 = arith.constant 0 : index
    %c4 = arith.constant 4 : index
    %60 = vector.load %arg8[%c0_57, %c0_58, %c0_59, %c4] : memref<1x16x16x12xf32, #tpu.memory_space<vmem>>, vector<1x16x16x8xf32>
    %61 = vector.shape_cast %60 : vector<1x16x16x8xf32> to vector<16x16x8xf32>
    %62 = vector.shape_cast %56 : vector<16x16x8xf32> to vector<1x16x16x8xf32>
    tpu.vector_store %arg8[%c0_57, %c0_58, %c0_59, %c4], %62 {strides = array<i32>} : memref<1x16x16x12xf32, #tpu.memory_space<vmem>>, vector<1x16x16x8xf32>,
    return
  }
  func.func @transform_0(%arg0: i32) -> (i32, i32, i32, i32) {
    %c0_i32 = arith.constant 0 : i32
    %c0_i32_0 = arith.constant 0 : i32
    %c0_i32_1 = arith.constant 0 : i32
    %c0_i32_2 = arith.constant 0 : i32
    return %arg0, %c0_i32, %c0_i32_0, %c0_i32_1 : i32, i32, i32, i32
  }
  func.func @transform_1(%arg0: i32) -> (i32, i32) {
    %c0_i32 = arith.constant 0 : i32
    %c0_i32_0 = arith.constant 0 : i32
    %c0_i32_1 = arith.constant 0 : i32
    return %c0_i32, %c0_i32_0 : i32, i32
  }
  func.func @transform_2(%arg0: i32) -> (i32, i32) {
    %c0_i32 = arith.constant 0 : i32
    %c0_i32_0 = arith.constant 0 : i32
    %c0_i32_1 = arith.constant 0 : i32
    return %c0_i32, %c0_i32_0 : i32, i32
  }
  func.func @transform_3(%arg0: i32) -> (i32, i32) {
    %c0_i32 = arith.constant 0 : i32
    %c0_i32_0 = arith.constant 0 : i32
    %c0_i32_1 = arith.constant 0 : i32
    return %c0_i32, %c0_i32_0 : i32, i32
  }
  func.func @transform_4(%arg0: i32) -> (i32, i32) {
    %c0_i32 = arith.constant 0 : i32
    %c0_i32_0 = arith.constant 0 : i32
    %c0_i32_1 = arith.constant 0 : i32
    return %c0_i32, %c0_i32_0 : i32, i32
  }
  func.func @transform_5(%arg0: i32) -> (i32, i32) {
    %c0_i32 = arith.constant 0 : i32
    %c0_i32_0 = arith.constant 0 : i32
    %c0_i32_1 = arith.constant 0 : i32
    return %c0_i32, %c0_i32_0 : i32, i32
  }
  func.func @transform_6(%arg0: i32) -> (i32, i32, i32) {
    %c0_i32 = arith.constant 0 : i32
    %c0_i32_0 = arith.constant 0 : i32
    %c0_i32_1 = arith.constant 0 : i32
    %c0_i32_2 = arith.constant 0 : i32
    return %c0_i32, %c0_i32_0, %c0_i32_1 : i32, i32, i32
  }
  func.func @transform_7(%arg0: i32) -> (i32, i32, i32, i32) {
    %c0_i32 = arith.constant 0 : i32
    %c0_i32_0 = arith.constant 0 : i32
    %c0_i32_1 = arith.constant 0 : i32
    %c0_i32_2 = arith.constant 0 : i32
    return %arg0, %c0_i32, %c0_i32_0, %c0_i32_1 : i32, i32, i32, i32
  }
}

</mosaic_0001>

<bundles_post_ra>
// kernel: tpu_custom_call.1
= control target key start
LH: loop header
LB: loop body
LE: loop exit
PB: predicated region body
PF: predicated region fallthrough
CT: control target
= control target key end

     0   :  { %s2846_s24 = smov 0   ;;  %s4047_s0 = inlined_call_operand.vmem [shape: f32[2,16,16,4], index: 0, kind: input, shape index: {}]   ;;  %s4048_s1 = inlined_call_operand.vmem [shape: f32[1,4], index: 1, kind: input, shape index: {}]   ;;  %s4049_s2 = inlined_call_operand.vmem [shape: f32[1,4], index: 2, kind: input, shape index: {}]   ;;  %s4050_s3 = inlined_call_operand.vmem [shape: bf16[4,32], index: 3, kind: input, shape index: {}]   ;;  %s4051_s4 = inlined_call_operand.vmem [shape: f32[1,32], index: 4, kind: input, shape index: {}]   ;;  %s4052_s5 = inlined_call_operand.vmem [shape: f32[1,32], index: 5, kind: input, shape index: {}]   ;;  %s4053_s6 = inlined_call_operand.vmem [shape: bf16[3,96,8], index: 6, kind: input, shape index: {}]   ;;  %s4054_s7 = inlined_call_operand.vmem [shape: f32[2,16,16,12], index: 7, kind: output, shape index: {}]  }
   0x1 LB: > { %s2325_s25 = sadd.s32 4294967295, %s2799_s24   ;;  %p2329_p0 = scmp.ge.s32.totalorder %s2799_s24, 1  ;;  %s2799_s24 = sphi %s2846_s24, %s17_s24  }
   0x2   : > { %p237_p1 = scmp.lt.s32.totalorder %s2799_s24, 3 }
   0x4   : > { %p238_p2 = pnand %p2329_p0, %p237_p1 }
   0x5   : > { %p269_p3 = scmp.lt.s32.totalorder (!%p238_p2), %s2325_s25, 1  ;;  %s2802_s14 = smov (!%p238_p2), 64  }
   0x6   : > { %241 = sbr.rel (%p238_p2) target bundleno = 913 (0x391), region = 48  ;;  %s2803_s16 = smov (!%p238_p2), 32  }
   0xb   : > { %v438_v0 = vld [vmem:[%s4050_s3] sm:$0x3]  ;;  %vm488_vm0 = vcmask 1041408   ;;  %s4056_s25 = smov (!%p269_p3, %s2325_s25), 1  ;;  %vm439_vm1 = vcmask 31744   ;;  %vm2804_vm2 = vmmov 0  }
   0xc   : > { %2761 = vmatprep.subr.msk.bf16.mxu0 %vm488_vm0, %v438_v0  ;;  %v490_v1 = vsel %vm488_vm0, %v438_v0, 0  ;;  %v2860_v2 = vld [vmem:[%s4048_s1] ss:$0 sm:$0xff]  ;;  %s2444_s30 = sshll.u32 %s4056_s25, 8  ;;  %vm891_vm3 = vcmask 523520   ;;  %vm958_vm4 = vcmask 253952  }
   0xd   : > { %2528 = vmatpush3.bf16.msra.mxu0 %v490_v1  ;;  %v2865_v3 = vld [vmem:[%s4049_s2] ss:$0 sm:$0xff]  ;;  %s2870_s12 = scalar_lea.vmem %s4047_s0, %s2444_s30  ;;  %s2875_s15 = scalar_lea.vmem %s4054_s7, %s2444_s30  ;;  %vm924_vm5 = vcmask 261120   ;;  %vm926_vm6 = vcmask 260096   ;;  %vm1071_vm7 = vcmask 785921   ;;  %vm1105_vm8 = vcmask 778752  }
   0xe   : > { %v280_v4 = vld [vmem:[%s2870_s12] sm:$0xff]  ;;  %v281_v5 = vld [vmem:[%s2870_s12 + $0x8] sm:$0xff]  ;;  %v282_v6 = vld [vmem:[%s2870_s12 + $0x10] sm:$0xff]  ;;  %vm1073_vm9 = vcmask 785920   ;;  %vm1219_vm10 = vcmask 785408   ;;  %vm1429_vm11 = vcmask 64512  }
   0xf   : > { %v320_v7 = vmul.f32 %v2860_v2, %v280_v4  ;;  %v321_v8 = vmul.f32 %v2860_v2, %v281_v5  ;;  %2077 = vst.msk [vmem:[%s2875_s15] sm:$0xff] %vm439_vm1, %v280_v4  ;;  %2078 = vst.msk [vmem:[%s2875_s15 + $0x8] sm:$0xff] %vm439_vm1, %v281_v5  ;;  %v283_v9 = vld [vmem:[%s2870_s12 + $0x18] sm:$0xff]  ;;  %v322_v10 = vmul.f32 %v2860_v2, %v282_v6  ;;  %v284_v11 = vld [vmem:[%s2870_s12 + $0x20] sm:$0xff]  ;;  %vm2237_vm12 = vcmask 97312  }
  0x10   : > { %2079 = vst.msk [vmem:[%s2875_s15 + $0x10] sm:$0xff] %vm439_vm1, %v282_v6  ;;  %v285_v12 = vld [vmem:[%s2870_s12 + $0x28] sm:$0xff]  ;;  %v323_v13 = vmul.f32 %v2860_v2, %v283_v9  ;;  %2080 = vst.msk [vmem:[%s2875_s15 + $0x18] sm:$0xff] %vm439_vm1, %v283_v9  ;;  %v324_v14 = vmul.f32 %v2860_v2, %v284_v11  ;;  %v286_v16 = vld [vmem:[%s2870_s12 + $0x30] sm:$0xff] }
  0x11   : > { %v325_v15 = vmul.f32 %v2860_v2, %v285_v12  ;;  %2081 = vst.msk [vmem:[%s2875_s15 + $0x20] sm:$0xff] %vm439_vm1, %v284_v11  ;;  %2082 = vst.msk [vmem:[%s2875_s15 + $0x28] sm:$0xff] %vm439_vm1, %v285_v12  ;;  %v287_v17 = vld [vmem:[%s2870_s12 + $0x38] sm:$0xff]  ;;  %v288_v18 = vld [vmem:[%s2870_s12 + $0x40] sm:$0xff]  ;;  %v358_v19 = vadd.f32 %v2865_v3, %v320_v7  ;;  %v359_v20 = vadd.f32 %v2865_v3, %v321_v8 }
  0x12   : > { %v360_v21 = vadd.f32 %v2865_v3, %v322_v10  ;;  %v326_v22 = vmul.f32 %v2860_v2, %v286_v16  ;;  %2083 = vst.msk [vmem:[%s2875_s15 + $0x30] sm:$0xff] %vm439_vm1, %v286_v16  ;;  %2084 = vst.msk [vmem:[%s2875_s15 + $0x38] sm:$0xff] %vm439_vm1, %v287_v17  ;;  %v289_v23 = vld [vmem:[%s2870_s12 + $0x48] sm:$0xff]  ;;  %v290_v24 = vld [vmem:[%s2870_s12 + $0x50] sm:$0xff]  ;;  %v361_v26 = vadd.f32 %v2865_v3, %v323_v13 }
  0x13   : > { %2085 = vst.msk [vmem:[%s2875_s15 + $0x40] sm:$0xff] %vm439_vm1, %v288_v18  ;;  %v291_v25 = vld [vmem:[%s2870_s12 + $0x58] sm:$0xff]  ;;  %v362_v27 = vadd.f32 %v2865_v3, %v324_v14  ;;  %v363_v28 = vadd.f32 %v2865_v3, %v325_v15  ;;  %v327_v29 = vmul.f32 %v2860_v2, %v287_v17  ;;  %2086 = vst.msk [vmem:[%s2875_s15 + $0x48] sm:$0xff] %vm439_vm1, %v289_v23  ;;  %v292_v30 = vld [vmem:[%s2870_s12 + $0x60] sm:$0xff]  ;;  %v390_v33 = vmax.f32 %v358_v19, 0.0 }
  0x14   : > { %2087 = vst.msk [vmem:[%s2875_s15 + $0x50] sm:$0xff] %vm439_vm1, %v290_v24  ;;  %2088 = vst.msk [vmem:[%s2875_s15 + $0x58] sm:$0xff] %vm439_vm1, %v291_v25  ;;  %v293_v31 = vld [vmem:[%s2870_s12 + $0x68] sm:$0xff]  ;;  %v2930_v32 = vld [vmem:[%s2870_s12 + $0x70] sm:$0xff]  ;;  %v391_v34 = vmax.f32 %v359_v20, 0.0  ;;  %v392_v35 = vmax.f32 %v360_v21, 0.0  ;;  %v364_v36 = vadd.f32 %v2865_v3, %v326_v22  ;;  %v328_v48 = vmul.f32 %v2860_v2, %v288_v18 }
  0x15   : > { %2089 = vst.msk [vmem:[%s2875_s15 + $0x60] sm:$0xff] %vm439_vm1, %v292_v30  ;;  %2090 = vst.msk [vmem:[%s2875_s15 + $0x68] sm:$0xff] %vm439_vm1, %v293_v31  ;;  %v2938_v37 = vld [vmem:[%s2870_s12 + $0x78] sm:$0xff]  ;;  %v2944_v38 = vld [vmem:[%s2870_s12 + $0x80] sm:$0xff]  ;;  %v393_v40 = vmax.f32 %v361_v26, 0.0  ;;  %v394_v41 = vmax.f32 %v362_v27, 0.0  ;;  %v365_v43 = vadd.f32 %v2865_v3, %v327_v29  ;;  %v329_v49 = vmul.f32 %v2860_v2, %v289_v23 }
  0x16   : > { %2091 = vst.msk [vmem:[%s2875_s15 + $0x70] sm:$0xff] %vm439_vm1, %v2930_v32  ;;  %v2947_v39 = vld [vmem:[%s2870_s12 + $0x88] sm:$0xff]  ;;  %v395_v42 = vmax.f32 %v363_v28, 0.0  ;;  %2092 = vst.msk [vmem:[%s2875_s15 + $0x78] sm:$0xff] %vm439_vm1, %v2938_v37  ;;  %v2960_v44 = vld [vmem:[%s2870_s12 + $0x90] sm:$0xff]  ;;  %v422_v47 = vpack.c.bf16 %v391_v34, %v390_v33  ;;  %v366_v58 = vadd.f32 %v2865_v3, %v328_v48  ;;  %v396_v63 = vmax.f32 %v364_v36, 0.0 }
  0x17   : > { %2093 = vst.msk [vmem:[%s2875_s15 + $0x80] sm:$0xff] %vm439_vm1, %v2944_v38  ;;  %2094 = vst.msk [vmem:[%s2875_s15 + $0x88] sm:$0xff] %vm439_vm1, %v2947_v39  ;;  %v2963_v45 = vld [vmem:[%s2870_s12 + $0x98] sm:$0xff]  ;;  %v2966_v46 = vld [vmem:[%s2870_s12 + $0xa0] sm:$0xff]  ;;  %v423_v53 = vpack.c.bf16 %v393_v40, %v392_v35  ;;  %v367_v59 = vadd.f32 %v2865_v3, %v329_v49  ;;  %v397_v0 = vmax.f32 %v365_v43, 0.0  ;;  %v330_v1 = vmul.f32 %v2860_v2, %v290_v24 }
  0x18   : > { %2095 = vst.msk [vmem:[%s2875_s15 + $0x90] sm:$0xff] %vm439_vm1, %v2960_v44  ;;  %2096 = vst.msk [vmem:[%s2875_s15 + $0x98] sm:$0xff] %vm439_vm1, %v2963_v45  ;;  %v2977_v50 = vld [vmem:[%s2870_s12 + $0xa8] sm:$0xff]  ;;  %v2983_v51 = vld [vmem:[%s2870_s12 + $0xb0] sm:$0xff]  ;;  %v424_v54 = vpack.c.bf16 %v395_v42, %v394_v41  ;;  %2529 = vmatprep.mubr.msk.bf16.mxu0 %vm439_vm1, %v422_v47  ;;  %v331_v4 = vmul.f32 %v2860_v2, %v291_v25  ;;  %v398_v7 = vmax.f32 %v366_v58, 0.0 }
  0x19   : > { %2097 = vst.msk [vmem:[%s2875_s15 + $0xa0] sm:$0xff] %vm439_vm1, %v2966_v46  ;;  %v2986_v52 = vld [vmem:[%s2870_s12 + $0xb8] sm:$0xff]  ;;  %2098 = vst.msk [vmem:[%s2875_s15 + $0xa8] sm:$0xff] %vm439_vm1, %v2977_v50  ;;  %v2998_v55 = vld [vmem:[%s2870_s12 + $0xc0] sm:$0xff]  ;;  %2530 = vmatmul.mubr.msk.bf16.vlgmr.msra.gmra.mxu0 %vm439_vm1, %v423_v53  ;;  %v399_v8 = vmax.f32 %v367_v59, 0.0  ;;  %v332_v9 = vmul.f32 %v2860_v2, %v292_v30  ;;  %v333_v10 = vmul.f32 %v2860_v2, %v293_v31 }
  0x1a   : > { %2099 = vst.msk [vmem:[%s2875_s15 + $0xb0] sm:$0xff] %vm439_vm1, %v2983_v51  ;;  %2100 = vst.msk [vmem:[%s2875_s15 + $0xb8] sm:$0xff] %vm439_vm1, %v2986_v52  ;;  %v3001_v56 = vld [vmem:[%s2870_s12 + $0xc8] sm:$0xff]  ;;  %v3004_v57 = vld [vmem:[%s2870_s12 + $0xd0] sm:$0xff]  ;;  %2533 = vmatprep.mubr.msk.bf16.mxu0 %vm439_vm1, %v424_v54  ;;  %v425_v11 = vpack.c.bf16 %v397_v0, %v396_v63  ;;  %v368_v12 = vadd.f32 %v2865_v3, %v330_v1  ;;  %v369_v13 = vadd.f32 %v2865_v3, %v331_v4 }
  0x1b   : > { %2101 = vst.msk [vmem:[%s2875_s15 + $0xc0] sm:$0xff] %vm439_vm1, %v2998_v55  ;;  %2102 = vst.msk [vmem:[%s2875_s15 + $0xc8] sm:$0xff] %vm439_vm1, %v3001_v56  ;;  %v3016_v60 = vld [vmem:[%s2870_s12 + $0xd8] sm:$0xff]  ;;  %v3022_v61 = vld [vmem:[%s2870_s12 + $0xe0] sm:$0xff]  ;;  %v426_v14 = vpack.c.bf16 %v399_v8, %v398_v7  ;;  %v370_v15 = vadd.f32 %v2865_v3, %v332_v9  ;;  %v371_v16 = vadd.f32 %v2865_v3, %v333_v10 }
  0x1c   : > { %2103 = vst.msk [vmem:[%s2875_s15 + $0xd0] sm:$0xff] %vm439_vm1, %v3004_v57  ;;  %v3025_v62 = vld [vmem:[%s2870_s12 + $0xe8] sm:$0xff]  ;;  %2104 = vst.msk [vmem:[%s2875_s15 + $0xd8] sm:$0xff] %vm439_vm1, %v3016_v60  ;;  %v3040_v5 = vld [vmem:[%s2870_s12 + $0xf0] sm:$0xff]  ;;  %v400_v17 = vmax.f32 %v368_v12, 0.0  ;;  %v401_v18 = vmax.f32 %v369_v13, 0.0  ;;  %v334_v19 = vmul.f32 %v2860_v2, %v2930_v32  ;;  %v335_v20 = vmul.f32 %v2860_v2, %v2938_v37 }
  0x1d   : > { %2105 = vst.msk [vmem:[%s2875_s15 + $0xe0] sm:$0xff] %vm439_vm1, %v3022_v61  ;;  %2106 = vst.msk [vmem:[%s2875_s15 + $0xe8] sm:$0xff] %vm439_vm1, %v3025_v62  ;;  %v3043_v6 = vld [vmem:[%s2870_s12 + $0xf8] sm:$0xff]  ;;  %v402_v21 = vmax.f32 %v370_v15, 0.0  ;;  %v403_v22 = vmax.f32 %v371_v16, 0.0  ;;  %v336_v23 = vmul.f32 %v2860_v2, %v2944_v38  ;;  %v337_v24 = vmul.f32 %v2860_v2, %v2947_v39 }
  0x1e   : > { %2107 = vst.msk [vmem:[%s2875_s15 + $0xf0] sm:$0xff] %vm439_vm1, %v3040_v5  ;;  %2108 = vst.msk [vmem:[%s2875_s15 + $0xf8] sm:$0xff] %vm439_vm1, %v3043_v6  ;;  %v427_v25 = vpack.c.bf16 %v401_v18, %v400_v17  ;;  %v372_v26 = vadd.f32 %v2865_v3, %v334_v19  ;;  %v373_v27 = vadd.f32 %v2865_v3, %v335_v20 }
  0x1f   : > { %v428_v28 = vpack.c.bf16 %v403_v22, %v402_v21  ;;  %v374_v29 = vadd.f32 %v2865_v3, %v336_v23  ;;  %v375_v30 = vadd.f32 %v2865_v3, %v337_v24  ;;  %v338_v33 = vmul.f32 %v2860_v2, %v2960_v44 }
  0x20   : > { %v404_v31 = vmax.f32 %v372_v26, 0.0  ;;  %v405_v32 = vmax.f32 %v373_v27, 0.0  ;;  %v339_v34 = vmul.f32 %v2860_v2, %v2963_v45  ;;  %v340_v37 = vmul.f32 %v2860_v2, %v2966_v46  ;;  %v2778_v26 = vld [vmem:[%s4053_s6 + $0x20] sm:$0xff]  }
  0x21   : > { %2534 = vmatmul.mubr.msk.bf16.gmra.mxu0 %vm439_vm1, %v425_v11  ;;  %v406_v35 = vmax.f32 %v374_v29, 0.0  ;;  %v407_v36 = vmax.f32 %v375_v30, 0.0  ;;  %v341_v38 = vmul.f32 %v2860_v2, %v2977_v50  ;;  %v376_v40 = vadd.f32 %v2865_v3, %v338_v33  ;;  %v3142_v27 = vld [vmem:[%s4051_s4] ss:$0 sm:$0xff] }
  0x22   : > { %2537 = vmatprep.mubr.msk.bf16.mxu0 %vm439_vm1, %v426_v14  ;;  %v429_v39 = vpack.c.bf16 %v405_v32, %v404_v31  ;;  %v377_v41 = vadd.f32 %v2865_v3, %v339_v34  ;;  %v378_v43 = vadd.f32 %v2865_v3, %v340_v37  ;;  %v342_v46 = vmul.f32 %v2860_v2, %v2983_v51  ;;  %v3147_v29 = vld [vmem:[%s4052_s5] ss:$0 sm:$0xff]  ;;  %v2779_v31 = vld [vmem:[%s4053_s6 + $0x48] sm:$0xff]   ;;  %v2780_v32 = vld [vmem:[%s4053_s6 + $0x18] sm:$0xff]  }
  0x23   : > { %v430_v42 = vpack.c.bf16 %v407_v36, %v406_v35  ;;  %v379_v44 = vadd.f32 %v2865_v3, %v341_v38  ;;  %v408_v45 = vmax.f32 %v376_v40, 0.0  ;;  %v343_v48 = vmul.f32 %v2860_v2, %v2986_v52  ;;  %v2781_v40 = vld [vmem:[%s4053_s6 + $0x40] sm:$0xff]  }
  0x24   : > { %v409_v47 = vmax.f32 %v377_v41, 0.0  ;;  %v410_v49 = vmax.f32 %v378_v43, 0.0  ;;  %v344_v53 = vmul.f32 %v2860_v2, %v2998_v55  ;;  %v345_v54 = vmul.f32 %v2860_v2, %v3001_v56  ;;  %v2782_v41 = vld [vmem:[%s4053_s6 + $0x10] sm:$0xff]  }
  0x25   : > { %v411_v50 = vmax.f32 %v379_v44, 0.0  ;;  %v380_v59 = vadd.f32 %v2865_v3, %v342_v46  ;;  %v381_v63 = vadd.f32 %v2865_v3, %v343_v48  ;;  %v346_v55 = vmul.f32 %v2860_v2, %v3004_v57  ;;  %v2783_v48 = vld [vmem:[%s4053_s6 + $0x38] sm:$0xff]  }
  0x26   : > { %v431_v58 = vpack.c.bf16 %v409_v47, %v408_v45  ;;  %v382_v51 = vadd.f32 %v2865_v3, %v344_v53  ;;  %v383_v52 = vadd.f32 %v2865_v3, %v345_v54  ;;  %v347_v56 = vmul.f32 %v2860_v2, %v3016_v60 }
  0x27   : > { %v432_v0 = vpack.c.bf16 %v411_v50, %v410_v49  ;;  %v412_v1 = vmax.f32 %v380_v59, 0.0  ;;  %v413_v4 = vmax.f32 %v381_v63, 0.0  ;;  %v348_v9 = vmul.f32 %v2860_v2, %v3022_v61  ;;  %v2784_v49 = vld [vmem:[%s4053_s6 + $0x8] sm:$0xff]   ;;  %v2785_v63 = vld [vmem:[%s4053_s6 + $0x30] sm:$0xff]  }
  0x28   : > { %v414_v7 = vmax.f32 %v382_v51, 0.0  ;;  %v415_v8 = vmax.f32 %v383_v52, 0.0  ;;  %v349_v10 = vmul.f32 %v2860_v2, %v3025_v62  ;;  %v384_v12 = vadd.f32 %v2865_v3, %v346_v55 }
  0x29   : > { %2538 = vmatmul.mubr.msk.bf16.gmra.mxu0 %vm439_vm1, %v427_v25  ;;  %v433_v11 = vpack.c.bf16 %v413_v4, %v412_v1  ;;  %v385_v13 = vadd.f32 %v2865_v3, %v347_v56  ;;  %v386_v57 = vadd.f32 %v2865_v3, %v348_v9  ;;  %v350_v61 = vmul.f32 %v2860_v2, %v3040_v5 }
  0x2a   : > { %2541 = vmatprep.mubr.msk.bf16.mxu0 %vm439_vm1, %v428_v28  ;;  %v434_v14 = vpack.c.bf16 %v415_v8, %v414_v7  ;;  %v387_v60 = vadd.f32 %v2865_v3, %v349_v10  ;;  %v416_v15 = vmax.f32 %v384_v12, 0.0  ;;  %v351_v62 = vmul.f32 %v2860_v2, %v3043_v6  ;;  %v2775_v2 = vld [vmem:[%s4053_s6 + $0x58] sm:$0xff]   ;;  %v2776_v6 = vld [vmem:[%s4053_s6 + $0x28] sm:$0xff]  }
  0x2b   : > { %v417_v16 = vmax.f32 %v385_v13, 0.0  ;;  %v418_v17 = vmax.f32 %v386_v57, 0.0  ;;  %v388_v20 = vadd.f32 %v2865_v3, %v350_v61  ;;  %v2801_v25 = vmov 0.0   ;;  %2561 = vmatprep.subr.bf16.mxu1 %v2775_v2 }
  0x2c   : > { %v419_v18 = vmax.f32 %v387_v60, 0.0  ;;  %v389_v21 = vadd.f32 %v2865_v3, %v351_v62  ;;  %2605 = vmatprep.subr.bf16.mxu0 %v2801_v25  ;;  %2562 = vmatpush3.bf16.msra.mxu1 %v2775_v2  ;;  %v2777_v3 = vld [vmem:[%s4053_s6 + $0x50] sm:$0xff]  }
  0x2d   : > { %v435_v19 = vpack.c.bf16 %v417_v16, %v416_v15  ;;  %v420_v23 = vmax.f32 %v388_v20, 0.0  ;;  %2606 = vmatpush3.bf16.msra.mxu0 %v2776_v6  ;;  %2563 = vmatprep.subr.bf16.mxu1 %v2777_v3 }
  0x2e   : > { %v436_v22 = vpack.c.bf16 %v419_v18, %v418_v17  ;;  %v421_v24 = vmax.f32 %v389_v21, 0.0  ;;  %2607 = vmatprep.subr.bf16.mxu0 %v2801_v25 }
  0x30   : > { %v437_v5 = vpack.c.bf16 %v421_v24, %v420_v23  ;;  %2564 = vmatpush3.bf16.msra.mxu1 %v2777_v3 }
  0x31   : > { %2542 = vmatmul.mubr.msk.bf16.gmra.mxu0 %vm439_vm1, %v429_v39  ;;  %2565 = vmatprep.subr.bf16.mxu1 %v2779_v31 }
  0x32   : > { %2545 = vmatprep.mubr.msk.bf16.mxu0 %vm439_vm1, %v430_v42  ;;  %2608 = vmatpush3.bf16.msra.mxu0 %v2778_v26 }
  0x33   : > { %2609 = vmatprep.subr.bf16.mxu0 %v2801_v25 }
  0x34   : > { %2566 = vmatpush3.bf16.msra.mxu1 %v2779_v31 }
  0x35   : > { %2567 = vmatprep.subr.bf16.mxu1 %v2781_v40 }
  0x36   : > { %2610 = vmatpush3.bf16.msra.mxu0 %v2780_v32 }
  0x37   : > { %2611 = vmatprep.subr.bf16.mxu0 %v2801_v25 }
  0x38   : > { %2568 = vmatpush3.bf16.msra.mxu1 %v2781_v40 }
  0x39   : > { %2546 = vmatmul.mubr.msk.bf16.gmra.mxu0 %vm439_vm1, %v431_v58  ;;  %2569 = vmatprep.subr.bf16.mxu1 %v2783_v48 }
  0x3a   : > { %2549 = vmatprep.mubr.msk.bf16.mxu0 %vm439_vm1, %v432_v0  ;;  %2612 = vmatpush3.bf16.msra.mxu0 %v2782_v41  ;;  %v2786_v0 = vld [vmem:[%s4053_s6] sm:$0xff]  }
  0x3b   : > { %2613 = vmatprep.subr.bf16.mxu0 %v2801_v25 }
  0x3c   : > { %2570 = vmatpush3.bf16.msra.mxu1 %v2783_v48 }
  0x3d   : > { %2571 = vmatprep.subr.bf16.mxu1 %v2785_v63 }
  0x3e   : > { %2614 = vmatpush3.bf16.msra.mxu0 %v2784_v49 }
  0x3f   : > { %2615 = vmatprep.subr.bf16.mxu0 %v2801_v25 }
  0x40   : > { %2572 = vmatpush3.bf16.msra.mxu1 %v2785_v63 }
  0x41   : > { %2550 = vmatmul.mubr.msk.bf16.gmra.mxu0 %vm439_vm1, %v433_v11  ;;  %2749 = vmatprep.subr.bf16.mxu1 %v2801_v25 }
  0x42   : > { %2553 = vmatprep.mubr.msk.bf16.mxu0 %vm439_vm1, %v434_v14  ;;  %2616 = vmatpush3.bf16.msra.mxu0 %v2786_v0 }
  0x43   : > { %2677 = vmatprep.subr.bf16.mxu0 %v2801_v25 }
  0x49   : > { %2554 = vmatmul.mubr.msk.bf16.gmra.mxu0 %vm439_vm1, %v435_v19 }
  0x4a   : > { %2557 = vmatprep.mubr.msk.bf16.mxu0 %vm439_vm1, %v436_v22 }
  0x51   : > { %2558 = vmatmul.mubr.msk.bf16.gmra.mxu0 %vm439_vm1, %v437_v5 }
  0x52   : > { %2617 = vmatprep.mubr.msk.bf16.mxu0 %vm2804_vm2, %v2801_v25 }
  0xd9   : > { %v2531_v28 = vpop.f32.mrf.mxu0 }
  0xda   : > { %v662_v30 = vmul.f32 %v2531_v28, %v3142_v27 }
  0xdb   : > { %v526_v33 = vpop.f32.mrf.mxu0 }
  0xdc   : > { %v701_v34 = vadd.f32 %v3147_v29, %v662_v30  ;;  %v660_v35 = vmul.f32 %v3142_v27, %v526_v33 }
  0xdd   : > { %v2532_v36 = vpop.f32.mrf.mxu0 }
  0xde   : > { %v3160_v37 = vmax.f32 %v701_v34, 0.0  ;;  %v699_v38 = vadd.f32 %v3147_v29, %v660_v35  ;;  %v663_v39 = vmul.f32 %v2532_v36, %v3142_v27 }
  0xdf   : > { %v529_v42 = vpop.f32.mrf.mxu0 }
  0xe0   : > { %v702_v43 = vadd.f32 %v3147_v29, %v663_v39  ;;  %979 = vrot.lane.b32.xlu0 %v3160_v37, %s2802_s14  ;;  %799 = vrot.lane.b32.xlu1 %v3160_v37, %s2803_s16  ;;  %v3175_v45 = vmax.f32 %v699_v38, 0.0  ;;  %v661_v46 = vmul.f32 %v3142_v27, %v529_v42 }
  0xe1   : > { %v2535_v44 = vpop.f32.mrf.mxu0 }
  0xe2   : > { %v3177_v47 = vmax.f32 %v702_v43, 0.0  ;;  %v700_v54 = vadd.f32 %v3147_v29, %v661_v46  ;;  %v666_v58 = vmul.f32 %v2535_v44, %v3142_v27 }
  0xe3   : > { %v542_v50 = vpop.f32.mrf.mxu0 }
  0xe4   : > { %795 = vrot.lane.b32.xlu0 %v3175_v45, %s2803_s16  ;;  %801 = vrot.lane.b32.xlu1 %v3177_v47, %s2803_s16  ;;  %v3205_v1 = vmax.f32 %v700_v54, 0.0  ;;  %v705_v4 = vadd.f32 %v3147_v29, %v666_v58  ;;  %v664_v9 = vmul.f32 %v3142_v27, %v542_v50 }
  0xe5   : > { %v2536_v53 = vpop.f32.mrf.mxu0 }
  0xe6   : > { %v667_v59 = vmul.f32 %v2536_v53, %v3142_v27  ;;  %v3217_v8 = vmax.f32 %v705_v4, 0.0  ;;  %v703_v14 = vadd.f32 %v3147_v29, %v664_v9 }
  0xe7   : > { %v545_v51 = vpop.f32.mrf.mxu0 }
  0xe8   : > { %975 = vrot.lane.b32.xlu0 %v3175_v45, %s2802_s14  ;;  %981 = vrot.lane.b32.xlu1 %v3177_v47, %s2802_s14  ;;  %v706_v55 = vadd.f32 %v3147_v29, %v667_v59  ;;  %v665_v11 = vmul.f32 %v3142_v27, %v545_v51  ;;  %v3236_v61 = vmax.f32 %v703_v14, 0.0 }
  0xe9   : > { %v2539_v52 = vpop.f32.mrf.mxu0 }
  0xea   : > { %v3220_v10 = vmax.f32 %v706_v55, 0.0  ;;  %v704_v57 = vadd.f32 %v3147_v29, %v665_v11  ;;  %v670_v15 = vmul.f32 %v2539_v52, %v3142_v27 }
  0xeb   : > { %v558_v56 = vpop.f32.mrf.mxu0 }
  0xec   : > { %977 = vrot.lane.b32.xlu1 %v3205_v1, %s2802_s14  ;;  %797 = vrot.lane.b32.xlu0 %v3205_v1, %s2803_s16  ;;  %v3238_v62 = vmax.f32 %v704_v57, 0.0  ;;  %v709_v19 = vadd.f32 %v3147_v29, %v670_v15  ;;  %v668_v6 = vmul.f32 %v3142_v27, %v558_v56 }
  0xed   : > { %v2540_v7 = vpop.f32.mrf.mxu0 }
  0xee   : > { %v671_v17 = vmul.f32 %v2540_v7, %v3142_v27  ;;  %v3256_v2 = vmax.f32 %v709_v19, 0.0  ;;  %v707_v35 = vadd.f32 %v3147_v29, %v668_v6 }
  0xef   : > { %v561_v12 = vpop.f32.mrf.mxu0 }
  0xf0   : > { %807 = vrot.lane.b32.xlu0 %v3217_v8, %s2803_s16  ;;  %809 = vrot.lane.b32.xlu1 %v3220_v10, %s2803_s16  ;;  %v710_v21 = vadd.f32 %v3147_v29, %v671_v17  ;;  %v669_v28 = vmul.f32 %v3142_v27, %v561_v12  ;;  %v3288_v44 = vmax.f32 %v707_v35, 0.0 }
  0xf1   : > { %v2543_v13 = vpop.f32.mrf.mxu0 }
  0xf2   : > { %v3259_v26 = vmax.f32 %v710_v21, 0.0  ;;  %v708_v38 = vadd.f32 %v3147_v29, %v669_v28  ;;  %v674_v46 = vmul.f32 %v2543_v13, %v3142_v27 }
  0xf3   : > { %v3229_v60 = vpop.f32.mrf.mxu0 }
  0xf4   : > { %987 = vrot.lane.b32.xlu0 %v3217_v8, %s2802_s14  ;;  %989 = vrot.lane.b32.xlu1 %v3220_v10, %s2802_s14  ;;  %v3291_v49 = vmax.f32 %v708_v38, 0.0  ;;  %v713_v0 = vadd.f32 %v3147_v29, %v674_v46  ;;  %v672_v12 = vmul.f32 %v3142_v27, %v3229_v60 }
  0xf5   : > { %v2544_v16 = vpop.f32.mrf.mxu0 }
  0xf6   : > { %v675_v50 = vmul.f32 %v2544_v16, %v3142_v27  ;;  %v3314_v11 = vmax.f32 %v713_v0, 0.0  ;;  %v711_v21 = vadd.f32 %v3147_v29, %v672_v12 }
  0xf7   : > { %v577_v18 = vpop.f32.mrf.mxu0 }
  0xf8   : > { %803 = vrot.lane.b32.xlu0 %v3236_v61, %s2803_s16  ;;  %805 = vrot.lane.b32.xlu1 %v3238_v62, %s2803_s16  ;;  %v714_v52 = vadd.f32 %v3147_v29, %v675_v50  ;;  %v673_v57 = vmul.f32 %v3142_v27, %v577_v18 }
  0xf9   : > { %v2547_v20 = vpop.f32.mrf.mxu0 }
  0xfa   : > { %v678_v22 = vmul.f32 %v2547_v20, %v3142_v27  ;;  %v3318_v14 = vmax.f32 %v714_v52, 0.0  ;;  %v712_v18 = vadd.f32 %v3147_v29, %v673_v57 }
  0xfb   : > { %v590_v23 = vpop.f32.mrf.mxu0 }
  0xfc   : > { %983 = vrot.lane.b32.xlu0 %v3236_v61, %s2802_s14  ;;  %985 = vrot.lane.b32.xlu1 %v3238_v62, %s2802_s14  ;;  %v3253_v24 = vadd.f32 %v3147_v29, %v678_v22  ;;  %v676_v5 = vmul.f32 %v3142_v27, %v590_v23 }
  0xfd   : > { %v2548_v3 = vpop.f32.mrf.mxu0 }
  0xfe   : > { %v3263_v30 = vadd.f32 %v3147_v29, %v676_v5  ;;  %v679_v31 = vmul.f32 %v2548_v3, %v3142_v27 }
  0xff   : > { %v593_v32 = vpop.f32.mrf.mxu0 }
 0x100   : > { %815 = vrot.lane.b32.xlu0 %v3256_v2, %s2803_s16  ;;  %817 = vrot.lane.b32.xlu1 %v3259_v26, %s2803_s16  ;;  %v3271_v33 = vadd.f32 %v3147_v29, %v679_v31  ;;  %v677_v34 = vmul.f32 %v3142_v27, %v593_v32  ;;  %v3339_v31 = vmax.f32 %v711_v21, 0.0  ;;  %v3341_v32 = vmax.f32 %v712_v18, 0.0 }
 0x101   : > { %v2551_v36 = vpop.f32.mrf.mxu0 }
 0x102   : > { %v3277_v39 = vadd.f32 %v3147_v29, %v677_v34  ;;  %v682_v40 = vmul.f32 %v2551_v36, %v3142_v27  ;;  %v3360_v46 = vmax.f32 %v3271_v33, 0.0 }
 0x103   : > { %v606_v41 = vpop.f32.mrf.mxu0 }
 0x104   : > { %995 = vrot.lane.b32.xlu0 %v3256_v2, %s2802_s14  ;;  %997 = vrot.lane.b32.xlu1 %v3259_v26, %s2802_s14  ;;  %v3285_v42 = vadd.f32 %v3147_v29, %v682_v40  ;;  %v680_v43 = vmul.f32 %v3142_v27, %v606_v41 }
 0x105   : > { %v2552_v48 = vpop.f32.mrf.mxu0 }
 0x106   : > { %v3295_v53 = vadd.f32 %v3147_v29, %v680_v43  ;;  %v683_v54 = vmul.f32 %v2552_v48, %v3142_v27  ;;  %v3357_v43 = vmax.f32 %v3253_v24, 0.0  ;;  %v3385_v24 = vmax.f32 %v3285_v42, 0.0 }
 0x107   : > { %v609_v58 = vpop.f32.mrf.mxu0 }
 0x108   : > { %811 = vrot.lane.b32.xlu0 %v3288_v44, %s2803_s16  ;;  %813 = vrot.lane.b32.xlu1 %v3291_v49, %s2803_s16  ;;  %v722_v59 = vadd.f32 %v3147_v29, %v683_v54  ;;  %v681_v63 = vmul.f32 %v3142_v27, %v609_v58  ;;  %v3398_v33 = vmax.f32 %v3295_v53, 0.0 }
 0x109   : > { %v2555_v51 = vpop.f32.mrf.mxu0 }
 0x10a   : > { %v720_v4 = vadd.f32 %v3147_v29, %v681_v63  ;;  %v686_v55 = vmul.f32 %v2555_v51, %v3142_v27 }
 0x10b   : > { %v622_v56 = vpop.f32.mrf.mxu0 }
 0x10c   : > { %991 = vrot.lane.b32.xlu0 %v3288_v44, %s2802_s14  ;;  %993 = vrot.lane.b32.xlu1 %v3291_v49, %s2802_s14  ;;  %v725_v7 = vadd.f32 %v3147_v29, %v686_v55  ;;  %v684_v9 = vmul.f32 %v3142_v27, %v622_v56 }
 0x10d   : > { %v2556_v13 = vpop.f32.mrf.mxu0 }
 0x10e   : > { %v723_v15 = vadd.f32 %v3147_v29, %v684_v9  ;;  %v687_v16 = vmul.f32 %v2556_v13, %v3142_v27  ;;  %v3410_v42 = vmax.f32 %v725_v7, 0.0 }
 0x10f   : > { %v625_v17 = vpop.f32.mrf.mxu0 }
 0x110   : > { %823 = vrot.lane.b32.xlu0 %v3314_v11, %s2803_s16  ;;  %825 = vrot.lane.b32.xlu1 %v3318_v14, %s2803_s16  ;;  %v726_v19 = vadd.f32 %v3147_v29, %v687_v16  ;;  %v685_v60 = vmul.f32 %v3142_v27, %v625_v17  ;;  %v3422_v50 = vmax.f32 %v723_v15, 0.0 }
 0x111   : > { %v2559_v20 = vpop.f32.mrf.mxu0 }
 0x112   : > { %v724_v22 = vadd.f32 %v3147_v29, %v685_v60  ;;  %v690_v23 = vmul.f32 %v2559_v20, %v3142_v27  ;;  %v3412_v48 = vmax.f32 %v726_v19, 0.0  ;;  %v2788_v60 = vld [vmem:[%s4053_s6 + $0x80] sm:$0xff]  }
 0x113   : > { %v638_v5 = vpop.f32.mrf.mxu0 }
 0x114   : > { %1003 = vrot.lane.b32.xlu0 %v3314_v11, %s2802_s14  ;;  %1005 = vrot.lane.b32.xlu1 %v3318_v14, %s2802_s14  ;;  %v729_v6 = vadd.f32 %v3147_v29, %v690_v23  ;;  %v688_v3 = vmul.f32 %v3142_v27, %v638_v5  ;;  %v3424_v53 = vmax.f32 %v724_v22, 0.0  ;;  %v2790_v5 = vld [vmem:[%s4053_s6 + $0x70] sm:$0xff]  }
 0x115   : > { %v2560_v28 = vpop.f32.mrf.mxu0 }
 0x116   : > { %v727_v34 = vadd.f32 %v3147_v29, %v688_v3  ;;  %v691_v35 = vmul.f32 %v2560_v28, %v3142_v27  ;;  %v3434_v54 = vmax.f32 %v729_v6, 0.0 }
 0x117   : > { %v641_v36 = vpop.f32.mrf.mxu0 }
 0x118   : > { %819 = vrot.lane.b32.xlu0 %v3339_v31, %s2803_s16  ;;  %821 = vrot.lane.b32.xlu1 %v3341_v32, %s2803_s16  ;;  %v730_v38 = vadd.f32 %v3147_v29, %v691_v35  ;;  %v689_v40 = vmul.f32 %v3142_v27, %v641_v36  ;;  %v3371_v27 = vmax.f32 %v3263_v30, 0.0  ;;  %v3387_v30 = vmax.f32 %v722_v59, 0.0  ;;  %v2791_v35 = vld [vmem:[%s4053_s6 + $0x68] sm:$0xff]  }
 0x119   : > { %v3442_v59 = vmax.f32 %v727_v34, 0.0 }
 0x11a   : > { %v728_v41 = vadd.f32 %v3147_v29, %v689_v40  ;;  %v3374_v29 = vmax.f32 %v3277_v39, 0.0  ;;  %v3400_v39 = vmax.f32 %v720_v4, 0.0  ;;  %v3436_v58 = vmax.f32 %v730_v38, 0.0  ;;  %v2792_v40 = vld [vmem:[%s4053_s6 + $0x60] sm:$0xff]  }
 0x11c   : > { %999 = vrot.lane.b32.xlu0 %v3339_v31, %s2802_s14  ;;  %1001 = vrot.lane.b32.xlu1 %v3341_v32, %s2802_s14  ;;  %v3444_v63 = vmax.f32 %v728_v41, 0.0 }
 0x120   : > { %831 = vrot.lane.b32.xlu0 %v3357_v43, %s2803_s16  ;;  %833 = vrot.lane.b32.xlu1 %v3360_v46, %s2803_s16 }
 0x124   : > { %1011 = vrot.lane.b32.xlu0 %v3357_v43, %s2802_s14  ;;  %1013 = vrot.lane.b32.xlu1 %v3360_v46, %s2802_s14 }
 0x128   : > { %827 = vrot.lane.b32.xlu0 %v3371_v27, %s2803_s16  ;;  %829 = vrot.lane.b32.xlu1 %v3374_v29, %s2803_s16 }
 0x12c   : > { %1007 = vrot.lane.b32.xlu0 %v3371_v27, %s2802_s14  ;;  %1009 = vrot.lane.b32.xlu1 %v3374_v29, %s2802_s14 }
 0x130   : > { %839 = vrot.lane.b32.xlu0 %v3385_v24, %s2803_s16  ;;  %841 = vrot.lane.b32.xlu1 %v3387_v30, %s2803_s16 }
 0x134   : > { %1019 = vrot.lane.b32.xlu0 %v3385_v24, %s2802_s14  ;;  %1021 = vrot.lane.b32.xlu1 %v3387_v30, %s2802_s14 }
 0x138   : > { %835 = vrot.lane.b32.xlu0 %v3398_v33, %s2803_s16  ;;  %837 = vrot.lane.b32.xlu1 %v3400_v39, %s2803_s16 }
 0x13c   : > { %1015 = vrot.lane.b32.xlu0 %v3398_v33, %s2802_s14  ;;  %1017 = vrot.lane.b32.xlu1 %v3400_v39, %s2802_s14 }
 0x140   : > { %847 = vrot.lane.b32.xlu0 %v3410_v42, %s2803_s16  ;;  %849 = vrot.lane.b32.xlu1 %v3412_v48, %s2803_s16 }
 0x144   : > { %1027 = vrot.lane.b32.xlu0 %v3410_v42, %s2802_s14  ;;  %1029 = vrot.lane.b32.xlu1 %v3412_v48, %s2802_s14 }
 0x148   : > { %843 = vrot.lane.b32.xlu0 %v3422_v50, %s2803_s16  ;;  %845 = vrot.lane.b32.xlu1 %v3424_v53, %s2803_s16 }
 0x14c   : > { %1023 = vrot.lane.b32.xlu0 %v3422_v50, %s2802_s14  ;;  %1025 = vrot.lane.b32.xlu1 %v3424_v53, %s2802_s14 }
 0x150   : > { %855 = vrot.lane.b32.xlu0 %v3434_v54, %s2803_s16  ;;  %857 = vrot.lane.b32.xlu1 %v3436_v58, %s2803_s16 }
 0x152   : > { %v980_v0 = vpop.permute.xlu0 %979  ;;  %v800_v51 = vpop.permute.xlu1 %799 }
 0x153   : > { %894 = vst.msk [vmem:[#allocation2 + $0x10] sm:$0xff] %vm891_vm3, %v800_v51 }
 0x154   : > { %960 = vst.msk [vmem:[#allocation2 + $0x10] sm:$0x1] %vm958_vm4, %v2801_v25  ;;  %851 = vrot.lane.b32.xlu0 %v3442_v59, %s2803_s16  ;;  %853 = vrot.lane.b32.xlu1 %v3444_v63, %s2803_s16  ;;  %s2805_s16 = smov 4  }
 0x156   : > { %v796_v52 = vpop.permute.xlu0 %795  ;;  %v802_v4 = vpop.permute.xlu1 %801 }
 0x157   : > { %892 = vst.msk [vmem:[#allocation2] sm:$0xff] %vm891_vm3, %v796_v52  ;;  %895 = vst.msk [vmem:[#allocation2 + $0x18] sm:$0xff] %vm891_vm3, %v802_v4 }
 0x158   : > { %959 = vst.msk [vmem:[#allocation2] sm:$0x1] %vm958_vm4, %v2801_v25  ;;  %1031 = vrot.lane.b32.xlu0 %v3442_v59, %s2802_s14  ;;  %1033 = vrot.lane.b32.xlu1 %v3444_v63, %s2802_s14 }
 0x159   : > { %928 = vst.msk [vmem:[#allocation2 + $0x11] sm:$0xff] %vm924_vm5, %v3160_v37 }
 0x15a   : > { %929 = vst.msk [vmem:[#allocation2 + $0x19] sm:$0x7f] %vm926_vm6, %v3177_v47  ;;  %v976_v55 = vpop.permute.xlu0 %975  ;;  %v982_v56 = vpop.permute.xlu1 %981 }
 0x15b   : > { %1075 = vst.msk [vmem:[#allocation2 + $0xf] sm:$0xfe] %vm1071_vm7, %v980_v0 }
 0x15c   : > { %1107 = vst.msk [vmem:[#allocation2 + $0x1f] sm:$0x1] %vm1105_vm8, %v2801_v25  ;;  %1035 = vrot.lane.b32.xlu0 %v3434_v54, %s2802_s14  ;;  %1037 = vrot.lane.b32.xlu1 %v3436_v58, %s2802_s14 }
 0x15d   : > { %1076 = vst.msk [vmem:[#allocation2 + $0x17] sm:$0xff] %vm1073_vm9, %v982_v56 }
 0x15e   : > { %v978_v37 = vpop.permute.xlu1 %977  ;;  %v798_v47 = vpop.permute.xlu0 %797 }
 0x15f   : > { %893 = vst.msk [vmem:[#allocation2 + $0x8] sm:$0xff] %vm891_vm3, %v798_v47 }
 0x160   : > { %925 = vst.msk [vmem:[#allocation2 + $0x1] sm:$0xff] %vm924_vm5, %v3175_v45 }
 0x161   : > { %927 = vst.msk [vmem:[#allocation2 + $0x9] sm:$0x7f] %vm926_vm6, %v3205_v1 }
 0x162   : > { %1072 = vst.msk [vmem:[#allocation2 - $0x1] sm:$0xfe] %vm1071_vm7, %v976_v55  ;;  %v808_v7 = vpop.permute.xlu0 %807  ;;  %v810_v9 = vpop.permute.xlu1 %809 }
 0x163   : > { %1074 = vst.msk [vmem:[#allocation2 + $0x7] sm:$0xff] %vm1073_vm9, %v978_v37 }
 0x164   : > { %1106 = vst.msk [vmem:[#allocation2 + $0xf] sm:$0x1] %vm1105_vm8, %v2801_v25  ;;  %v1124_v12 = vld [vmem:[#allocation2 + $0x10] sm:$0xff]  ;;  %v1125_v13 = vld [vmem:[#allocation2 + $0x18] sm:$0xff] }
 0x165   : > { %898 = vst.msk [vmem:[#allocation2 + $0x30] sm:$0xff] %vm891_vm3, %v808_v7  ;;  %899 = vst.msk [vmem:[#allocation2 + $0x38] sm:$0xff] %vm891_vm3, %v810_v9  ;;  %v3497_v19 = vpack.c.bf16 %v1125_v13, %v1124_v12 }
 0x166   : > { %962 = vst.msk [vmem:[#allocation2 + $0x30] sm:$0x1] %vm958_vm4, %v2801_v25  ;;  %v988_v45 = vpop.permute.xlu0 %987  ;;  %v990_v1 = vpop.permute.xlu1 %989 }
 0x167   : > { %932 = vst.msk [vmem:[#allocation2 + $0x31] sm:$0xff] %vm924_vm5, %v3217_v8  ;;  %v2787_v8 = vld [vmem:[%s4053_s6 + $0x88] sm:$0xff]  }
 0x168   : > { %933 = vst.msk [vmem:[#allocation2 + $0x39] sm:$0x7f] %vm926_vm6, %v3220_v10 }
 0x169   : > { %1109 = vst.msk [vmem:[#allocation2 + $0x3f] sm:$0x1] %vm1105_vm8, %v2801_v25 }
 0x16a   : > { %1079 = vst.msk [vmem:[#allocation2 + $0x2f] sm:$0xfe] %vm1071_vm7, %v988_v45  ;;  %v1122_v57 = vld [vmem:[#allocation2] sm:$0xff]  ;;  %v804_v10 = vpop.permute.xlu0 %803  ;;  %v806_v17 = vpop.permute.xlu1 %805 }
 0x16b   : > { %1080 = vst.msk [vmem:[#allocation2 + $0x37] sm:$0xff] %vm1073_vm9, %v990_v1  ;;  %v1123_v15 = vld [vmem:[#allocation2 + $0x8] sm:$0xff] }
 0x16c   : > { %v1154_v16 = vpack.c.bf16 %v1123_v15, %v1122_v57  ;;  %896 = vst.msk [vmem:[#allocation2 + $0x20] sm:$0xff] %vm891_vm3, %v804_v10  ;;  %897 = vst.msk [vmem:[#allocation2 + $0x28] sm:$0xff] %vm891_vm3, %v806_v17 }
 0x16d   : > { %961 = vst.msk [vmem:[#allocation2 + $0x20] sm:$0x1] %vm958_vm4, %v2801_v25 }
 0x16e   : > { %2573 = vmatprep.mubr.msk.bf16.mxu1 %vm1219_vm10, %v1154_v16  ;;  %2618 = vmatmul.mubr.msk.bf16.vlgmr.msra.gmra.mxu0 %vm1219_vm10, %v1154_v16  ;;  %930 = vst.msk [vmem:[#allocation2 + $0x21] sm:$0xff] %vm924_vm5, %v3236_v61  ;;  %v984_v20 = vpop.permute.xlu0 %983  ;;  %v986_v61 = vpop.permute.xlu1 %985 }
 0x16f   : > { %931 = vst.msk [vmem:[#allocation2 + $0x29] sm:$0x7f] %vm926_vm6, %v3238_v62  ;;  %2574 = vmatmul.mubr.msk.bf16.vlgmr.msra.gmra.mxu1 %vm1219_vm10, %v3497_v19  ;;  %2621 = vmatprep.mubr.msk.bf16.mxu0 %vm2804_vm2, %v2801_v25  ;;  %v2789_v62 = vld [vmem:[%s4053_s6 + $0x78] sm:$0xff]  }
 0x170   : > { %1108 = vst.msk [vmem:[#allocation2 + $0x2f] sm:$0x1] %vm1105_vm8, %v2801_v25  ;;  %2755 = vmatpush3.bf16.msra.mxu1 %v2787_v8  ;;  %2678 = vmatpush3.bf16.msra.mxu0 %v2787_v8 }
 0x171   : > { %2750 = vmatprep.subr.bf16.mxu1 %v2801_v25  ;;  %2679 = vmatprep.subr.bf16.mxu0 %v2801_v25  ;;  %1077 = vst.msk [vmem:[#allocation2 + $0x1f] sm:$0xfe] %vm1071_vm7, %v984_v20 }
 0x172   : > { %1078 = vst.msk [vmem:[#allocation2 + $0x27] sm:$0xff] %vm1073_vm9, %v986_v61  ;;  %v816_v21 = vpop.permute.xlu0 %815  ;;  %v818_v18 = vpop.permute.xlu1 %817  ;;  %v1128_v22 = vld [vmem:[#allocation2 + $0x30] sm:$0xff]  ;;  %v1129_v23 = vld [vmem:[#allocation2 + $0x38] sm:$0xff] }
 0x173   : > { %902 = vst.msk [vmem:[#allocation2 + $0x50] sm:$0xff] %vm891_vm3, %v816_v21  ;;  %903 = vst.msk [vmem:[#allocation2 + $0x58] sm:$0xff] %vm891_vm3, %v818_v18  ;;  %v3550_v34 = vpack.c.bf16 %v1129_v23, %v1128_v22 }
 0x174   : > { %2756 = vmatpush3.bf16.msra.mxu1 %v2788_v60  ;;  %2680 = vmatpush3.bf16.msra.mxu0 %v2788_v60  ;;  %964 = vst.msk [vmem:[#allocation2 + $0x50] sm:$0x1] %vm958_vm4, %v2801_v25 }
 0x175   : > { %2751 = vmatprep.subr.bf16.mxu1 %v2801_v25  ;;  %2681 = vmatprep.subr.bf16.mxu0 %v2801_v25  ;;  %936 = vst.msk [vmem:[#allocation2 + $0x51] sm:$0xff] %vm924_vm5, %v3256_v2 }
 0x176   : > { %2622 = vmatmul.mubr.msk.bf16.gmra.mxu0 %vm1219_vm10, %v3497_v19  ;;  %937 = vst.msk [vmem:[#allocation2 + $0x59] sm:$0x7f] %vm926_vm6, %v3259_v26  ;;  %v996_v6 = vpop.permute.xlu0 %995  ;;  %v998_v3 = vpop.permute.xlu1 %997 }
 0x177   : > { %2625 = vmatprep.mubr.msk.bf16.mxu0 %vm2804_vm2, %v2801_v25  ;;  %1111 = vst.msk [vmem:[#allocation2 + $0x5f] sm:$0x1] %vm1105_vm8, %v2801_v25 }
 0x178   : > { %2757 = vmatpush3.bf16.msra.mxu1 %v2789_v62  ;;  %2682 = vmatpush3.bf16.msra.mxu0 %v2789_v62  ;;  %1083 = vst.msk [vmem:[#allocation2 + $0x4f] sm:$0xfe] %vm1071_vm7, %v996_v6 }
 0x179   : > { %v1126_v2 = vld [vmem:[#allocation2 + $0x20] sm:$0xff]  ;;  %v1127_v28 = vld [vmem:[#allocation2 + $0x28] sm:$0xff]  ;;  %2752 = vmatprep.subr.bf16.mxu1 %v2801_v25  ;;  %2683 = vmatprep.subr.bf16.mxu0 %v2801_v25  ;;  %1084 = vst.msk [vmem:[#allocation2 + $0x57] sm:$0xff] %vm1073_vm9, %v998_v3 }
 0x17a   : > { %v3548_v26 = vpack.c.bf16 %v1127_v28, %v1126_v2  ;;  %v812_v36 = vpop.permute.xlu0 %811  ;;  %v814_v38 = vpop.permute.xlu1 %813 }
 0x17b   : > { %900 = vst.msk [vmem:[#allocation2 + $0x40] sm:$0xff] %vm891_vm3, %v812_v36  ;;  %901 = vst.msk [vmem:[#allocation2 + $0x48] sm:$0xff] %vm891_vm3, %v814_v38 }
 0x17c   : > { %2577 = vmatprep.mubr.msk.bf16.mxu1 %vm1219_vm10, %v3548_v26  ;;  %2758 = vmatpush3.bf16.msra.mxu1 %v2790_v5  ;;  %963 = vst.msk [vmem:[#allocation2 + $0x40] sm:$0x1] %vm958_vm4, %v2801_v25 }
 0x17d   : > { %2578 = vmatmul.mubr.msk.bf16.gmra.mxu1 %vm1219_vm10, %v3550_v34  ;;  %2753 = vmatprep.subr.bf16.mxu1 %v2801_v25  ;;  %934 = vst.msk [vmem:[#allocation2 + $0x41] sm:$0xff] %vm924_vm5, %v3288_v44 }
 0x17e   : > { %2626 = vmatmul.mubr.msk.bf16.gmra.mxu0 %vm1219_vm10, %v3548_v26  ;;  %935 = vst.msk [vmem:[#allocation2 + $0x49] sm:$0x7f] %vm926_vm6, %v3291_v49  ;;  %v992_v41 = vpop.permute.xlu0 %991  ;;  %v994_v0 = vpop.permute.xlu1 %993 }
 0x17f   : > { %2629 = vmatprep.mubr.msk.bf16.mxu0 %vm2804_vm2, %v2801_v25  ;;  %2684 = vmatpush3.bf16.msra.mxu0 %v2790_v5  ;;  %1110 = vst.msk [vmem:[#allocation2 + $0x4f] sm:$0x1] %vm1105_vm8, %v2801_v25 }
 0x180   : > { %2759 = vmatpush3.bf16.msra.mxu1 %v2791_v35  ;;  %2685 = vmatprep.subr.bf16.mxu0 %v2801_v25  ;;  %1081 = vst.msk [vmem:[#allocation2 + $0x3f] sm:$0xfe] %vm1071_vm7, %v992_v41  ;;  %v1132_v51 = vld [vmem:[#allocation2 + $0x50] sm:$0xff]  ;;  %v1133_v52 = vld [vmem:[#allocation2 + $0x58] sm:$0xff] }
 0x181   : > { %2754 = vmatprep.subr.bf16.mxu1 %v2801_v25  ;;  %1082 = vst.msk [vmem:[#allocation2 + $0x47] sm:$0xff] %vm1073_vm9, %v994_v0 }
 0x182   : > { %v824_v44 = vpop.permute.xlu0 %823  ;;  %v826_v49 = vpop.permute.xlu1 %825 }
 0x183   : > { %2686 = vmatpush3.bf16.msra.mxu0 %v2791_v35  ;;  %906 = vst.msk [vmem:[#allocation2 + $0x70] sm:$0xff] %vm891_vm3, %v824_v44  ;;  %907 = vst.msk [vmem:[#allocation2 + $0x78] sm:$0xff] %vm891_vm3, %v826_v49 }
 0x184   : > { %2760 = vmatpush3.bf16.msra.mxu1 %v2792_v40  ;;  %2687 = vmatprep.subr.bf16.mxu0 %v2801_v25  ;;  %966 = vst.msk [vmem:[#allocation2 + $0x70] sm:$0x1] %vm958_vm4, %v2801_v25 }
 0x185   : > { %940 = vst.msk [vmem:[#allocation2 + $0x71] sm:$0xff] %vm924_vm5, %v3314_v11 }
 0x186   : > { %2630 = vmatmul.mubr.msk.bf16.gmra.mxu0 %vm1219_vm10, %v3550_v34  ;;  %941 = vst.msk [vmem:[#allocation2 + $0x79] sm:$0x7f] %vm926_vm6, %v3318_v14  ;;  %v1004_v4 = vpop.permute.xlu0 %1003  ;;  %v1006_v55 = vpop.permute.xlu1 %1005  ;;  %v3600_v14 = vpack.c.bf16 %v1133_v52, %v1132_v51 }
 0x187   : > { %2633 = vmatprep.mubr.msk.bf16.mxu0 %vm2804_vm2, %v2801_v25  ;;  %2688 = vmatpush3.bf16.msra.mxu0 %v2792_v40  ;;  %1113 = vst.msk [vmem:[#allocation2 + $0x7f] sm:$0x1] %vm1105_vm8, %v2801_v25 }
 0x188   : > { %v1130_v56 = vld [vmem:[#allocation2 + $0x40] sm:$0xff]  ;;  %v1131_v37 = vld [vmem:[#allocation2 + $0x48] sm:$0xff]  ;;  %1087 = vst.msk [vmem:[#allocation2 + $0x6f] sm:$0xfe] %vm1071_vm7, %v1004_v4 }
 0x189   : > { %1088 = vst.msk [vmem:[#allocation2 + $0x77] sm:$0xff] %vm1073_vm9, %v1006_v55  ;;  %v3598_v11 = vpack.c.bf16 %v1131_v37, %v1130_v56 }
 0x18a   : > { %v820_v47 = vpop.permute.xlu0 %819  ;;  %v822_v7 = vpop.permute.xlu1 %821 }
 0x18b   : > { %2581 = vmatprep.mubr.msk.bf16.mxu1 %vm1219_vm10, %v3598_v11  ;;  %904 = vst.msk [vmem:[#allocation2 + $0x60] sm:$0xff] %vm891_vm3, %v820_v47  ;;  %905 = vst.msk [vmem:[#allocation2 + $0x68] sm:$0xff] %vm891_vm3, %v822_v7 }
 0x18c   : > { %2582 = vmatmul.mubr.msk.bf16.gmra.mxu1 %vm1219_vm10, %v3600_v14  ;;  %965 = vst.msk [vmem:[#allocation2 + $0x60] sm:$0x1] %vm958_vm4, %v2801_v25 }
 0x18d   : > { %938 = vst.msk [vmem:[#allocation2 + $0x61] sm:$0xff] %vm924_vm5, %v3339_v31 }
 0x18e   : > { %2634 = vmatmul.mubr.msk.bf16.gmra.mxu0 %vm1219_vm10, %v3598_v11  ;;  %939 = vst.msk [vmem:[#allocation2 + $0x69] sm:$0x7f] %vm926_vm6, %v3341_v32  ;;  %v1000_v9 = vpop.permute.xlu0 %999  ;;  %v1002_v45 = vpop.permute.xlu1 %1001 }
 0x18f   : > { %2637 = vmatprep.mubr.msk.bf16.mxu0 %vm2804_vm2, %v2801_v25  ;;  %1112 = vst.msk [vmem:[#allocation2 + $0x6f] sm:$0x1] %vm1105_vm8, %v2801_v25 }
 0x190   : > { %1085 = vst.msk [vmem:[#allocation2 + $0x5f] sm:$0xfe] %vm1071_vm7, %v1000_v9  ;;  %v1136_v31 = vld [vmem:[#allocation2 + $0x70] sm:$0xff]  ;;  %v1137_v32 = vld [vmem:[#allocation2 + $0x78] sm:$0xff] }
 0x191   : > { %1086 = vst.msk [vmem:[#allocation2 + $0x67] sm:$0xff] %vm1073_vm9, %v1002_v45  ;;  %v3640_v8 = vpack.c.bf16 %v1137_v32, %v1136_v31 }
 0x192   : > { %v832_v1 = vpop.permute.xlu0 %831  ;;  %v834_v12 = vpop.permute.xlu1 %833 }
 0x193   : > { %910 = vst.msk [vmem:[#allocation2 + $0x90] sm:$0xff] %vm891_vm3, %v832_v1  ;;  %911 = vst.msk [vmem:[#allocation2 + $0x98] sm:$0xff] %vm891_vm3, %v834_v12 }
 0x194   : > { %968 = vst.msk [vmem:[#allocation2 + $0x90] sm:$0x1] %vm958_vm4, %v2801_v25 }
 0x195   : > { %944 = vst.msk [vmem:[#allocation2 + $0x91] sm:$0xff] %vm924_vm5, %v3357_v43 }
 0x196   : > { %2638 = vmatmul.mubr.msk.bf16.gmra.mxu0 %vm1219_vm10, %v3600_v14  ;;  %945 = vst.msk [vmem:[#allocation2 + $0x99] sm:$0x7f] %vm926_vm6, %v3360_v46  ;;  %v1012_v13 = vpop.permute.xlu0 %1011  ;;  %v1014_v57 = vpop.permute.xlu1 %1013 }
 0x197   : > { %2641 = vmatprep.mubr.msk.bf16.mxu0 %vm2804_vm2, %v2801_v25  ;;  %1115 = vst.msk [vmem:[#allocation2 + $0x9f] sm:$0x1] %vm1105_vm8, %v2801_v25 }
 0x198   : > { %v1134_v15 = vld [vmem:[#allocation2 + $0x60] sm:$0xff]  ;;  %v1135_v16 = vld [vmem:[#allocation2 + $0x68] sm:$0xff]  ;;  %1091 = vst.msk [vmem:[#allocation2 + $0x8f] sm:$0xfe] %vm1071_vm7, %v1012_v13 }
 0x199   : > { %1092 = vst.msk [vmem:[#allocation2 + $0x97] sm:$0xff] %vm1073_vm9, %v1014_v57  ;;  %v3638_v43 = vpack.c.bf16 %v1135_v16, %v1134_v15 }
 0x19a   : > { %v828_v46 = vpop.permute.xlu0 %827  ;;  %v830_v10 = vpop.permute.xlu1 %829 }
 0x19b   : > { %2585 = vmatprep.mubr.msk.bf16.mxu1 %vm1219_vm10, %v3638_v43  ;;  %908 = vst.msk [vmem:[#allocation2 + $0x80] sm:$0xff] %vm891_vm3, %v828_v46  ;;  %909 = vst.msk [vmem:[#allocation2 + $0x88] sm:$0xff] %vm891_vm3, %v830_v10 }
 0x19c   : > { %2586 = vmatmul.mubr.msk.bf16.gmra.mxu1 %vm1219_vm10, %v3640_v8  ;;  %967 = vst.msk [vmem:[#allocation2 + $0x80] sm:$0x1] %vm958_vm4, %v2801_v25 }
 0x19d   : > { %942 = vst.msk [vmem:[#allocation2 + $0x81] sm:$0xff] %vm924_vm5, %v3371_v27 }
 0x19e   : > { %2642 = vmatmul.mubr.msk.bf16.gmra.mxu0 %vm1219_vm10, %v3638_v43  ;;  %943 = vst.msk [vmem:[#allocation2 + $0x89] sm:$0x7f] %vm926_vm6, %v3374_v29  ;;  %v1008_v17 = vpop.permute.xlu0 %1007  ;;  %v1010_v60 = vpop.permute.xlu1 %1009 }
 0x19f   : > { %2645 = vmatprep.mubr.msk.bf16.mxu0 %vm2804_vm2, %v2801_v25  ;;  %1114 = vst.msk [vmem:[#allocation2 + $0x8f] sm:$0x1] %vm1105_vm8, %v2801_v25 }
 0x1a0   : > { %1089 = vst.msk [vmem:[#allocation2 + $0x7f] sm:$0xfe] %vm1071_vm7, %v1008_v17  ;;  %v1140_v27 = vld [vmem:[#allocation2 + $0x90] sm:$0xff]  ;;  %v1141_v29 = vld [vmem:[#allocation2 + $0x98] sm:$0xff] }
 0x1a1   : > { %1090 = vst.msk [vmem:[#allocation2 + $0x87] sm:$0xff] %vm1073_vm9, %v1010_v60  ;;  %v3680_v23 = vpack.c.bf16 %v1141_v29, %v1140_v27 }
 0x1a2   : > { %v840_v20 = vpop.permute.xlu0 %839  ;;  %v842_v61 = vpop.permute.xlu1 %841 }
 0x1a3   : > { %914 = vst.msk [vmem:[#allocation2 + $0xb0] sm:$0xff] %vm891_vm3, %v840_v20  ;;  %915 = vst.msk [vmem:[#allocation2 + $0xb8] sm:$0xff] %vm891_vm3, %v842_v61 }
 0x1a4   : > { %970 = vst.msk [vmem:[#allocation2 + $0xb0] sm:$0x1] %vm958_vm4, %v2801_v25 }
 0x1a5   : > { %948 = vst.msk [vmem:[#allocation2 + $0xb1] sm:$0xff] %vm924_vm5, %v3385_v24 }
 0x1a6   : > { %2646 = vmatmul.mubr.msk.bf16.gmra.mxu0 %vm1219_vm10, %v3640_v8  ;;  %949 = vst.msk [vmem:[#allocation2 + $0xb9] sm:$0x7f] %vm926_vm6, %v3387_v30  ;;  %v1020_v62 = vpop.permute.xlu0 %1019  ;;  %v1022_v21 = vpop.permute.xlu1 %1021 }
 0x1a7   : > { %2649 = vmatprep.mubr.msk.bf16.mxu0 %vm2804_vm2, %v2801_v25  ;;  %1117 = vst.msk [vmem:[#allocation2 + $0xbf] sm:$0x1] %vm1105_vm8, %v2801_v25 }
 0x1a8   : > { %v1138_v18 = vld [vmem:[#allocation2 + $0x80] sm:$0xff]  ;;  %v1139_v22 = vld [vmem:[#allocation2 + $0x88] sm:$0xff]  ;;  %1095 = vst.msk [vmem:[#allocation2 + $0xaf] sm:$0xfe] %vm1071_vm7, %v1020_v62 }
 0x1a9   : > { %1096 = vst.msk [vmem:[#allocation2 + $0xb7] sm:$0xff] %vm1073_vm9, %v1022_v21  ;;  %v3678_v24 = vpack.c.bf16 %v1139_v22, %v1138_v18 }
 0x1aa   : > { %v836_v30 = vpop.permute.xlu0 %835  ;;  %v838_v5 = vpop.permute.xlu1 %837 }
 0x1ab   : > { %2589 = vmatprep.mubr.msk.bf16.mxu1 %vm1219_vm10, %v3678_v24  ;;  %912 = vst.msk [vmem:[#allocation2 + $0xa0] sm:$0xff] %vm891_vm3, %v836_v30  ;;  %913 = vst.msk [vmem:[#allocation2 + $0xa8] sm:$0xff] %vm891_vm3, %v838_v5 }
 0x1ac   : > { %2590 = vmatmul.mubr.msk.bf16.gmra.mxu1 %vm1219_vm10, %v3680_v23  ;;  %969 = vst.msk [vmem:[#allocation2 + $0xa0] sm:$0x1] %vm958_vm4, %v2801_v25 }
 0x1ad   : > { %946 = vst.msk [vmem:[#allocation2 + $0xa1] sm:$0xff] %vm924_vm5, %v3398_v33 }
 0x1ae   : > { %2650 = vmatmul.mubr.msk.bf16.gmra.mxu0 %vm1219_vm10, %v3678_v24  ;;  %947 = vst.msk [vmem:[#allocation2 + $0xa9] sm:$0x7f] %vm926_vm6, %v3400_v39  ;;  %v1016_v6 = vpop.permute.xlu0 %1015  ;;  %v1018_v3 = vpop.permute.xlu1 %1017 }
 0x1af   : > { %2653 = vmatprep.mubr.msk.bf16.mxu0 %vm2804_vm2, %v2801_v25  ;;  %1116 = vst.msk [vmem:[#allocation2 + $0xaf] sm:$0x1] %vm1105_vm8, %v2801_v25 }
 0x1b0   : > { %1093 = vst.msk [vmem:[#allocation2 + $0x9f] sm:$0xfe] %vm1071_vm7, %v1016_v6  ;;  %v1144_v33 = vld [vmem:[#allocation2 + $0xb0] sm:$0xff]  ;;  %v1145_v39 = vld [vmem:[#allocation2 + $0xb8] sm:$0xff] }
 0x1b1   : > { %1094 = vst.msk [vmem:[#allocation2 + $0xa7] sm:$0xff] %vm1073_vm9, %v1018_v3  ;;  %v3720_v41 = vpack.c.bf16 %v1145_v39, %v1144_v33 }
 0x1b2   : > { %v848_v2 = vpop.permute.xlu0 %847  ;;  %v850_v28 = vpop.permute.xlu1 %849 }
 0x1b3   : > { %918 = vst.msk [vmem:[#allocation2 + $0xd0] sm:$0xff] %vm891_vm3, %v848_v2  ;;  %919 = vst.msk [vmem:[#allocation2 + $0xd8] sm:$0xff] %vm891_vm3, %v850_v28 }
 0x1b4   : > { %972 = vst.msk [vmem:[#allocation2 + $0xd0] sm:$0x1] %vm958_vm4, %v2801_v25 }
 0x1b5   : > { %952 = vst.msk [vmem:[#allocation2 + $0xd1] sm:$0xff] %vm924_vm5, %v3410_v42 }
 0x1b6   : > { %2654 = vmatmul.mubr.msk.bf16.gmra.mxu0 %vm1219_vm10, %v3680_v23  ;;  %953 = vst.msk [vmem:[#allocation2 + $0xd9] sm:$0x7f] %vm926_vm6, %v3412_v48  ;;  %v1028_v35 = vpop.permute.xlu0 %1027  ;;  %v1030_v36 = vpop.permute.xlu1 %1029 }
 0x1b7   : > { %2657 = vmatprep.mubr.msk.bf16.mxu0 %vm2804_vm2, %v2801_v25  ;;  %1119 = vst.msk [vmem:[#allocation2 + $0xdf] sm:$0x1] %vm1105_vm8, %v2801_v25 }
 0x1b8   : > { %v1142_v38 = vld [vmem:[#allocation2 + $0xa0] sm:$0xff]  ;;  %v1143_v40 = vld [vmem:[#allocation2 + $0xa8] sm:$0xff]  ;;  %1099 = vst.msk [vmem:[#allocation2 + $0xcf] sm:$0xfe] %vm1071_vm7, %v1028_v35 }
 0x1b9   : > { %1100 = vst.msk [vmem:[#allocation2 + $0xd7] sm:$0xff] %vm1073_vm9, %v1030_v36  ;;  %v3718_v42 = vpack.c.bf16 %v1143_v40, %v1142_v38 }
 0x1ba   : > { %v844_v48 = vpop.permute.xlu0 %843  ;;  %v846_v0 = vpop.permute.xlu1 %845 }
 0x1bb   : > { %2593 = vmatprep.mubr.msk.bf16.mxu1 %vm1219_vm10, %v3718_v42  ;;  %916 = vst.msk [vmem:[#allocation2 + $0xc0] sm:$0xff] %vm891_vm3, %v844_v48  ;;  %917 = vst.msk [vmem:[#allocation2 + $0xc8] sm:$0xff] %vm891_vm3, %v846_v0 }
 0x1bc   : > { %2594 = vmatmul.mubr.msk.bf16.gmra.mxu1 %vm1219_vm10, %v3720_v41  ;;  %971 = vst.msk [vmem:[#allocation2 + $0xc0] sm:$0x1] %vm958_vm4, %v2801_v25 }
 0x1bd   : > { %950 = vst.msk [vmem:[#allocation2 + $0xc1] sm:$0xff] %vm924_vm5, %v3422_v50 }
 0x1be   : > { %2658 = vmatmul.mubr.msk.bf16.gmra.mxu0 %vm1219_vm10, %v3718_v42  ;;  %951 = vst.msk [vmem:[#allocation2 + $0xc9] sm:$0x7f] %vm926_vm6, %v3424_v53  ;;  %v1024_v44 = vpop.permute.xlu0 %1023  ;;  %v1026_v49 = vpop.permute.xlu1 %1025 }
 0x1bf   : > { %2661 = vmatprep.mubr.msk.bf16.mxu0 %vm2804_vm2, %v2801_v25  ;;  %1118 = vst.msk [vmem:[#allocation2 + $0xcf] sm:$0x1] %vm1105_vm8, %v2801_v25 }
 0x1c0   : > { %1097 = vst.msk [vmem:[#allocation2 + $0xbf] sm:$0xfe] %vm1071_vm7, %v1024_v44  ;;  %v1148_v50 = vld [vmem:[#allocation2 + $0xd0] sm:$0xff]  ;;  %v1149_v53 = vld [vmem:[#allocation2 + $0xd8] sm:$0xff] }
 0x1c1   : > { %1098 = vst.msk [vmem:[#allocation2 + $0xc7] sm:$0xff] %vm1073_vm9, %v1026_v49 }
 0x1c2   : > { %v856_v51 = vpop.permute.xlu0 %855  ;;  %v858_v52 = vpop.permute.xlu1 %857 }
 0x1c3   : > { %922 = vst.msk [vmem:[#allocation2 + $0xf0] sm:$0xff] %vm891_vm3, %v856_v51  ;;  %923 = vst.msk [vmem:[#allocation2 + $0xf8] sm:$0xff] %vm891_vm3, %v858_v52 }
 0x1c4   : > { %974 = vst.msk [vmem:[#allocation2 + $0xf0] sm:$0x1] %vm958_vm4, %v2801_v25 }
 0x1c5   : > { %956 = vst.msk [vmem:[#allocation2 + $0xf1] sm:$0xff] %vm924_vm5, %v3434_v54 }
 0x1c6   : > { %2662 = vmatmul.mubr.msk.bf16.gmra.mxu0 %vm1219_vm10, %v3720_v41  ;;  %957 = vst.msk [vmem:[#allocation2 + $0xf9] sm:$0x7f] %vm926_vm6, %v3436_v58  ;;  %v852_v4 = vpop.permute.xlu0 %851  ;;  %v854_v55 = vpop.permute.xlu1 %853  ;;  %v3766_v58 = vpack.c.bf16 %v1149_v53, %v1148_v50 }
 0x1c7   : > { %2665 = vmatprep.mubr.msk.bf16.mxu0 %vm2804_vm2, %v2801_v25  ;;  %1121 = vst.msk [vmem:[#allocation2 + $0xff] sm:$0x1] %vm1105_vm8, %v2801_v25 }
 0x1c8   : > { %v1146_v56 = vld [vmem:[#allocation2 + $0xc0] sm:$0xff]  ;;  %v1147_v37 = vld [vmem:[#allocation2 + $0xc8] sm:$0xff]  ;;  %920 = vst.msk [vmem:[#allocation2 + $0xe0] sm:$0xff] %vm891_vm3, %v852_v4  ;;  %921 = vst.msk [vmem:[#allocation2 + $0xe8] sm:$0xff] %vm891_vm3, %v854_v55 }
 0x1c9   : > { %v3758_v54 = vpack.c.bf16 %v1147_v37, %v1146_v56  ;;  %973 = vst.msk [vmem:[#allocation2 + $0xe0] sm:$0x1] %vm958_vm4, %v2801_v25 }
 0x1ca   : > { %954 = vst.msk [vmem:[#allocation2 + $0xe1] sm:$0xff] %vm924_vm5, %v3442_v59  ;;  %v1032_v47 = vpop.permute.xlu0 %1031  ;;  %v1034_v7 = vpop.permute.xlu1 %1033 }
 0x1cb   : > { %955 = vst.msk [vmem:[#allocation2 + $0xe9] sm:$0x7f] %vm926_vm6, %v3444_v63  ;;  %2597 = vmatprep.mubr.msk.bf16.mxu1 %vm1219_vm10, %v3758_v54 }
 0x1cc   : > { %1120 = vst.msk [vmem:[#allocation2 + $0xef] sm:$0x1] %vm1105_vm8, %v2801_v25  ;;  %2598 = vmatmul.mubr.msk.bf16.gmra.mxu1 %vm1219_vm10, %v3766_v58 }
 0x1cd   : > { %1101 = vst.msk [vmem:[#allocation2 + $0xdf] sm:$0xfe] %vm1071_vm7, %v1032_v47 }
 0x1ce   : > { %1102 = vst.msk [vmem:[#allocation2 + $0xe7] sm:$0xff] %vm1073_vm9, %v1034_v7  ;;  %2666 = vmatmul.mubr.msk.bf16.gmra.mxu0 %vm1219_vm10, %v3758_v54  ;;  %v1036_v59 = vpop.permute.xlu0 %1035  ;;  %v1038_v63 = vpop.permute.xlu1 %1037 }
 0x1cf   : > { %2669 = vmatprep.mubr.msk.bf16.mxu0 %vm2804_vm2, %v2801_v25  ;;  %1103 = vst.msk [vmem:[#allocation2 + $0xef] sm:$0xfe] %vm1071_vm7, %v1036_v59 }
 0x1d0   : > { %1104 = vst.msk [vmem:[#allocation2 + $0xf7] sm:$0xff] %vm1073_vm9, %v1038_v63 }
 0x1d5   : > { %v1150_v9 = vld [vmem:[#allocation2 + $0xe0] sm:$0xff]  ;;  %v1151_v45 = vld [vmem:[#allocation2 + $0xe8] sm:$0xff] }
 0x1d6   : > { %2670 = vmatmul.mubr.msk.bf16.gmra.mxu0 %vm1219_vm10, %v3766_v58  ;;  %v3784_v1 = vpack.c.bf16 %v1151_v45, %v1150_v9 }
 0x1d7   : > { %2673 = vmatprep.mubr.msk.bf16.mxu0 %vm2804_vm2, %v2801_v25  ;;  %v1152_v12 = vld [vmem:[#allocation2 + $0xf0] sm:$0xff]  ;;  %v1153_v31 = vld [vmem:[#allocation2 + $0xf8] sm:$0xff] }
 0x1d8   : > { %2601 = vmatprep.mubr.msk.bf16.mxu1 %vm1219_vm10, %v3784_v1  ;;  %v3790_v32 = vpack.c.bf16 %v1153_v31, %v1152_v12 }
 0x1da   : > { %2602 = vmatmul.mubr.msk.bf16.gmra.mxu1 %vm1219_vm10, %v3790_v32 }
 0x1db   : > { %2693 = vmatprep.mubr.msk.bf16.mxu1 %vm2804_vm2, %v2801_v25 }
 0x1de   : > { %2674 = vmatmul.mubr.msk.bf16.gmra.mxu0 %vm1219_vm10, %v3784_v1 }
 0x1df   : > { %2689 = vmatprep.mubr.msk.bf16.mxu0 %vm2804_vm2, %v2801_v25 }
 0x1e2   : > { %2694 = vmatmul.mubr.msk.bf16.vlgmr.msra.gmra.mxu1 %vm1219_vm10, %v3548_v26 }
 0x1e3   : > { %2697 = vmatprep.mubr.msk.bf16.mxu1 %vm2804_vm2, %v2801_v25 }
 0x1e6   : > { %2690 = vmatmul.mubr.msk.bf16.vlgmr.msra.gmra.mxu0 %vm1219_vm10, %v3497_v19 }
 0x1ea   : > { %2698 = vmatmul.mubr.msk.bf16.gmra.mxu1 %vm1219_vm10, %v3550_v34 }
 0x1eb   : > { %2701 = vmatprep.mubr.msk.bf16.mxu1 %vm2804_vm2, %v2801_v25 }
 0x1f2   : > { %2702 = vmatmul.mubr.msk.bf16.gmra.mxu1 %vm1219_vm10, %v3598_v11 }
 0x1f3   : > { %2705 = vmatprep.mubr.msk.bf16.mxu1 %vm2804_vm2, %v2801_v25 }
 0x1fa   : > { %2706 = vmatmul.mubr.msk.bf16.gmra.mxu1 %vm1219_vm10, %v3600_v14 }
 0x1fb   : > { %2709 = vmatprep.mubr.msk.bf16.mxu1 %vm2804_vm2, %v2801_v25 }
 0x202   : > { %2710 = vmatmul.mubr.msk.bf16.gmra.mxu1 %vm1219_vm10, %v3638_v43 }
 0x203   : > { %2713 = vmatprep.mubr.msk.bf16.mxu1 %vm2804_vm2, %v2801_v25 }
 0x20a   : > { %2714 = vmatmul.mubr.msk.bf16.gmra.mxu1 %vm1219_vm10, %v3640_v8 }
 0x20b   : > { %2717 = vmatprep.mubr.msk.bf16.mxu1 %vm2804_vm2, %v2801_v25 }
 0x212   : > { %2718 = vmatmul.mubr.msk.bf16.gmra.mxu1 %vm1219_vm10, %v3678_v24 }
 0x213   : > { %2721 = vmatprep.mubr.msk.bf16.mxu1 %vm2804_vm2, %v2801_v25 }
 0x21a   : > { %2722 = vmatmul.mubr.msk.bf16.gmra.mxu1 %vm1219_vm10, %v3680_v23 }
 0x21b   : > { %2725 = vmatprep.mubr.msk.bf16.mxu1 %vm2804_vm2, %v2801_v25 }
 0x222   : > { %2726 = vmatmul.mubr.msk.bf16.gmra.mxu1 %vm1219_vm10, %v3718_v42 }
 0x223   : > { %2729 = vmatprep.mubr.msk.bf16.mxu1 %vm2804_vm2, %v2801_v25 }
 0x22a   : > { %2730 = vmatmul.mubr.msk.bf16.gmra.mxu1 %vm1219_vm10, %v3720_v41 }
 0x22b   : > { %2733 = vmatprep.mubr.msk.bf16.mxu1 %vm2804_vm2, %v2801_v25 }
 0x22e   : > { %v1574_v19 = vpop.f32.mrf.mxu0 }
 0x22f   : > { %v2575_v26 = vpop.f32.mrf.mxu1 }
 0x230   : > { %1432 = vst.msk [vmem:[#allocation3 + $0x10] sm:$0xff] %vm1429_vm11, %v2575_v26  ;;  %v2619_v34 = vpop.f32.mrf.mxu0 }
 0x231   : > { %v1302_v11 = vpop.f32.mrf.mxu1 }
 0x232   : > { %1430 = vst.msk [vmem:[#allocation3] sm:$0xff] %vm1429_vm11, %v1302_v11  ;;  %v1577_v14 = vpop.f32.mrf.mxu0  ;;  %2734 = vmatmul.mubr.msk.bf16.gmra.mxu1 %vm1219_vm10, %v3758_v54 }
 0x233   : > { %v2576_v13 = vpop.f32.mrf.mxu1  ;;  %2737 = vmatprep.mubr.msk.bf16.mxu1 %vm2804_vm2, %v2801_v25 }
 0x234   : > { %1433 = vst.msk [vmem:[#allocation3 + $0x18] sm:$0xff] %vm1429_vm11, %v2576_v13  ;;  %v2620_v57 = vpop.f32.mrf.mxu0 }
 0x235   : > { %v1305_v15 = vpop.f32.mrf.mxu1 }
 0x236   : > { %1431 = vst.msk [vmem:[#allocation3 + $0x8] sm:$0xff] %vm1429_vm11, %v1305_v15  ;;  %v1582_v16 = vpop.f32.mrf.mxu0 }
 0x237   : > { %v1462_v43 = vld [vmem:[#allocation3 + $0x10] sm:$0xff] }
 0x238   : > { %v1693_v8 = vadd.f32 %v1574_v19, %v1462_v43  ;;  %v2623_v46 = vpop.f32.mrf.mxu0 }
 0x23a   : > { %1723 = vst.msk [vmem:[#allocation3 + $0x10] sm:$0xff] %vm1429_vm11, %v1693_v8  ;;  %v1585_v10 = vpop.f32.mrf.mxu0  ;;  %2738 = vmatmul.mubr.msk.bf16.gmra.mxu1 %vm1219_vm10, %v3766_v58 }
 0x23b   : > { %v1463_v17 = vld [vmem:[#allocation3 + $0x18] sm:$0xff]  ;;  %2741 = vmatprep.mubr.msk.bf16.mxu1 %vm2804_vm2, %v2801_v25 }
 0x23c   : > { %v1694_v60 = vadd.f32 %v1577_v14, %v1463_v17  ;;  %v2624_v20 = vpop.f32.mrf.mxu0 }
 0x23d   : > { %v2579_v61 = vpop.f32.mrf.mxu1 }
 0x23e   : > { %1724 = vst.msk [vmem:[#allocation3 + $0x18] sm:$0xff] %vm1429_vm11, %v1694_v60  ;;  %1436 = vst.msk [vmem:[#allocation3 + $0x30] sm:$0xff] %vm1429_vm11, %v2579_v61  ;;  %v1590_v27 = vpop.f32.mrf.mxu0 }
 0x23f   : > { %v1318_v29 = vpop.f32.mrf.mxu1 }
 0x240   : > { %1434 = vst.msk [vmem:[#allocation3 + $0x20] sm:$0xff] %vm1429_vm11, %v1318_v29  ;;  %v2627_v62 = vpop.f32.mrf.mxu0 }
 0x241   : > { %v2580_v21 = vpop.f32.mrf.mxu1 }
 0x242   : > { %1437 = vst.msk [vmem:[#allocation3 + $0x38] sm:$0xff] %vm1429_vm11, %v2580_v21  ;;  %v1593_v18 = vpop.f32.mrf.mxu0  ;;  %2742 = vmatmul.mubr.msk.bf16.gmra.mxu1 %vm1219_vm10, %v3784_v1 }
 0x243   : > { %v1321_v22 = vpop.f32.mrf.mxu1  ;;  %2745 = vmatprep.mubr.msk.bf16.mxu1 %vm2804_vm2, %v2801_v25 }
 0x244   : > { %1435 = vst.msk [vmem:[#allocation3 + $0x28] sm:$0xff] %vm1429_vm11, %v1321_v22  ;;  %v2628_v24 = vpop.f32.mrf.mxu0 }
 0x245   : > { %v1466_v23 = vld [vmem:[#allocation3 + $0x30] sm:$0xff] }
 0x246   : > { %v1697_v30 = vadd.f32 %v1590_v27, %v1466_v23  ;;  %v1598_v5 = vpop.f32.mrf.mxu0 }
 0x247   : > { %v1464_v6 = vld [vmem:[#allocation3 + $0x20] sm:$0xff] }
 0x248   : > { %1727 = vst.msk [vmem:[#allocation3 + $0x30] sm:$0xff] %vm1429_vm11, %v1697_v30  ;;  %v1695_v3 = vadd.f32 %v1582_v16, %v1464_v6  ;;  %v2631_v2 = vpop.f32.mrf.mxu0 }
 0x249   : > { %v1467_v28 = vld [vmem:[#allocation3 + $0x38] sm:$0xff] }
 0x24a   : > { %1725 = vst.msk [vmem:[#allocation3 + $0x20] sm:$0xff] %vm1429_vm11, %v1695_v3  ;;  %v1698_v33 = vadd.f32 %v1593_v18, %v1467_v28  ;;  %v1601_v39 = vpop.f32.mrf.mxu0  ;;  %2746 = vmatmul.mubr.msk.bf16.gmra.mxu1 %vm1219_vm10, %v3790_v32 }
 0x24b   : > { %v1465_v35 = vld [vmem:[#allocation3 + $0x28] sm:$0xff] }
 0x24c   : > { %1728 = vst.msk [vmem:[#allocation3 + $0x38] sm:$0xff] %vm1429_vm11, %v1698_v33  ;;  %v1696_v36 = vadd.f32 %v1585_v10, %v1465_v35  ;;  %v2632_v38 = vpop.f32.mrf.mxu0  ;;  %v2583_v25 = vpop.f32.mrf.mxu1 }
 0x24d   : > { %1440 = vst.msk [vmem:[#allocation3 + $0x50] sm:$0xff] %vm1429_vm11, %v2583_v25 }
 0x24e   : > { %1726 = vst.msk [vmem:[#allocation3 + $0x28] sm:$0xff] %vm1429_vm11, %v1696_v36  ;;  %v1606_v40 = vpop.f32.mrf.mxu0  ;;  %v1334_v42 = vpop.f32.mrf.mxu1 }
 0x24f   : > { %1438 = vst.msk [vmem:[#allocation3 + $0x40] sm:$0xff] %vm1429_vm11, %v1334_v42 }
 0x250   : > { %v2635_v41 = vpop.f32.mrf.mxu0  ;;  %v2584_v48 = vpop.f32.mrf.mxu1 }
 0x251   : > { %1441 = vst.msk [vmem:[#allocation3 + $0x58] sm:$0xff] %vm1429_vm11, %v2584_v48 }
 0x252   : > { %v1609_v0 = vpop.f32.mrf.mxu0  ;;  %v1337_v44 = vpop.f32.mrf.mxu1 }
 0x253   : > { %1439 = vst.msk [vmem:[#allocation3 + $0x48] sm:$0xff] %vm1429_vm11, %v1337_v44 }
 0x254   : > { %v2636_v49 = vpop.f32.mrf.mxu0  ;;  %v1470_v51 = vld [vmem:[#allocation3 + $0x50] sm:$0xff] }
 0x255   : > { %v1701_v52 = vadd.f32 %v1606_v40, %v1470_v51 }
 0x256   : > { %v1614_v50 = vpop.f32.mrf.mxu0  ;;  %v1468_v53 = vld [vmem:[#allocation3 + $0x40] sm:$0xff] }
 0x257   : > { %1731 = vst.msk [vmem:[#allocation3 + $0x50] sm:$0xff] %vm1429_vm11, %v1701_v52  ;;  %v1699_v4 = vadd.f32 %v1598_v5, %v1468_v53 }
 0x258   : > { %v2639_v55 = vpop.f32.mrf.mxu0  ;;  %v1471_v56 = vld [vmem:[#allocation3 + $0x58] sm:$0xff] }
 0x259   : > { %1729 = vst.msk [vmem:[#allocation3 + $0x40] sm:$0xff] %vm1429_vm11, %v1699_v4  ;;  %v1702_v37 = vadd.f32 %v1609_v0, %v1471_v56 }
 0x25a   : > { %v1617_v54 = vpop.f32.mrf.mxu0  ;;  %v1469_v58 = vld [vmem:[#allocation3 + $0x48] sm:$0xff] }
 0x25b   : > { %1732 = vst.msk [vmem:[#allocation3 + $0x58] sm:$0xff] %vm1429_vm11, %v1702_v37  ;;  %v1700_v47 = vadd.f32 %v1601_v39, %v1469_v58 }
 0x25c   : > { %v2640_v7 = vpop.f32.mrf.mxu0  ;;  %v2587_v59 = vpop.f32.mrf.mxu1 }
 0x25d   : > { %1730 = vst.msk [vmem:[#allocation3 + $0x48] sm:$0xff] %vm1429_vm11, %v1700_v47  ;;  %1444 = vst.msk [vmem:[#allocation3 + $0x70] sm:$0xff] %vm1429_vm11, %v2587_v59 }
 0x25e   : > { %v1622_v63 = vpop.f32.mrf.mxu0  ;;  %v1350_v9 = vpop.f32.mrf.mxu1 }
 0x25f   : > { %1442 = vst.msk [vmem:[#allocation3 + $0x60] sm:$0xff] %vm1429_vm11, %v1350_v9 }
 0x260   : > { %v2643_v45 = vpop.f32.mrf.mxu0  ;;  %v2588_v1 = vpop.f32.mrf.mxu1 }
 0x261   : > { %1445 = vst.msk [vmem:[#allocation3 + $0x78] sm:$0xff] %vm1429_vm11, %v2588_v1 }
 0x262   : > { %v1625_v12 = vpop.f32.mrf.mxu0  ;;  %v1353_v31 = vpop.f32.mrf.mxu1 }
 0x263   : > { %1443 = vst.msk [vmem:[#allocation3 + $0x68] sm:$0xff] %vm1429_vm11, %v1353_v31 }
 0x264   : > { %v2644_v32 = vpop.f32.mrf.mxu0  ;;  %v1474_v19 = vld [vmem:[#allocation3 + $0x70] sm:$0xff] }
 0x265   : > { %v1705_v26 = vadd.f32 %v1622_v63, %v1474_v19 }
 0x266   : > { %v1630_v34 = vpop.f32.mrf.mxu0  ;;  %v1472_v11 = vld [vmem:[#allocation3 + $0x60] sm:$0xff] }
 0x267   : > { %1735 = vst.msk [vmem:[#allocation3 + $0x70] sm:$0xff] %vm1429_vm11, %v1705_v26  ;;  %v1703_v14 = vadd.f32 %v1614_v50, %v1472_v11 }
 0x268   : > { %v2647_v13 = vpop.f32.mrf.mxu0  ;;  %v1475_v57 = vld [vmem:[#allocation3 + $0x78] sm:$0xff] }
 0x269   : > { %1733 = vst.msk [vmem:[#allocation3 + $0x60] sm:$0xff] %vm1429_vm11, %v1703_v14  ;;  %v1706_v15 = vadd.f32 %v1625_v12, %v1475_v57 }
 0x26a   : > { %v1633_v16 = vpop.f32.mrf.mxu0  ;;  %v1473_v43 = vld [vmem:[#allocation3 + $0x68] sm:$0xff] }
 0x26b   : > { %1736 = vst.msk [vmem:[#allocation3 + $0x78] sm:$0xff] %vm1429_vm11, %v1706_v15  ;;  %v1704_v8 = vadd.f32 %v1617_v54, %v1473_v43 }
 0x26c   : > { %v2648_v46 = vpop.f32.mrf.mxu0  ;;  %v2591_v10 = vpop.f32.mrf.mxu1 }
 0x26d   : > { %1734 = vst.msk [vmem:[#allocation3 + $0x68] sm:$0xff] %vm1429_vm11, %v1704_v8  ;;  %1448 = vst.msk [vmem:[#allocation3 + $0x90] sm:$0xff] %vm1429_vm11, %v2591_v10 }
 0x26e   : > { %v1638_v17 = vpop.f32.mrf.mxu0  ;;  %v1366_v60 = vpop.f32.mrf.mxu1 }
 0x26f   : > { %1446 = vst.msk [vmem:[#allocation3 + $0x80] sm:$0xff] %vm1429_vm11, %v1366_v60 }
 0x270   : > { %v2651_v20 = vpop.f32.mrf.mxu0  ;;  %v2592_v61 = vpop.f32.mrf.mxu1 }
 0x271   : > { %1449 = vst.msk [vmem:[#allocation3 + $0x98] sm:$0xff] %vm1429_vm11, %v2592_v61 }
 0x272   : > { %v1641_v27 = vpop.f32.mrf.mxu0  ;;  %v1369_v29 = vpop.f32.mrf.mxu1 }
 0x273   : > { %1447 = vst.msk [vmem:[#allocation3 + $0x88] sm:$0xff] %vm1429_vm11, %v1369_v29 }
 0x274   : > { %v2652_v62 = vpop.f32.mrf.mxu0  ;;  %v1478_v21 = vld [vmem:[#allocation3 + $0x90] sm:$0xff] }
 0x275   : > { %v1709_v18 = vadd.f32 %v1638_v17, %v1478_v21 }
 0x276   : > { %v1646_v22 = vpop.f32.mrf.mxu0  ;;  %v1476_v24 = vld [vmem:[#allocation3 + $0x80] sm:$0xff] }
 0x277   : > { %1739 = vst.msk [vmem:[#allocation3 + $0x90] sm:$0xff] %vm1429_vm11, %v1709_v18  ;;  %v1707_v23 = vadd.f32 %v1630_v34, %v1476_v24 }
 0x278   : > { %v2655_v30 = vpop.f32.mrf.mxu0  ;;  %v1479_v5 = vld [vmem:[#allocation3 + $0x98] sm:$0xff] }
 0x279   : > { %1737 = vst.msk [vmem:[#allocation3 + $0x80] sm:$0xff] %vm1429_vm11, %v1707_v23  ;;  %v1710_v6 = vadd.f32 %v1641_v27, %v1479_v5  ;;  %v1755_v27 = vld [vmem:[#allocation3 + $0x10] sm:$0xff] }
 0x27a   : > { %v1649_v3 = vpop.f32.mrf.mxu0  ;;  %v1477_v2 = vld [vmem:[#allocation3 + $0x88] sm:$0xff] }
 0x27b   : > { %1740 = vst.msk [vmem:[#allocation3 + $0x98] sm:$0xff] %vm1429_vm11, %v1710_v6  ;;  %v1708_v28 = vadd.f32 %v1633_v16, %v1477_v2  ;;  %v1756_v2 = vld [vmem:[#allocation3 + $0x18] sm:$0xff] }
 0x27c   : > { %v2656_v33 = vpop.f32.mrf.mxu0  ;;  %v2595_v39 = vpop.f32.mrf.mxu1 }
 0x27d   : > { %1738 = vst.msk [vmem:[#allocation3 + $0x88] sm:$0xff] %vm1429_vm11, %v1708_v28  ;;  %1452 = vst.msk [vmem:[#allocation3 + $0xb0] sm:$0xff] %vm1429_vm11, %v2595_v39 }
 0x27e   : > { %v1654_v35 = vpop.f32.mrf.mxu0  ;;  %v1382_v36 = vpop.f32.mrf.mxu1 }
 0x27f   : > { %1450 = vst.msk [vmem:[#allocation3 + $0xa0] sm:$0xff] %vm1429_vm11, %v1382_v36  ;;  %v1754_v36 = vld [vmem:[#allocation3 + $0x8] sm:$0xff] }
 0x280   : > { %v2659_v38 = vpop.f32.mrf.mxu0  ;;  %v2596_v25 = vpop.f32.mrf.mxu1 }
 0x281   : > { %1453 = vst.msk [vmem:[#allocation3 + $0xb8] sm:$0xff] %vm1429_vm11, %v2596_v25 }
 0x282   : > { %v1657_v40 = vpop.f32.mrf.mxu0  ;;  %v1385_v42 = vpop.f32.mrf.mxu1 }
 0x283   : > { %1451 = vst.msk [vmem:[#allocation3 + $0xa8] sm:$0xff] %vm1429_vm11, %v1385_v42 }
 0x284   : > { %v2660_v41 = vpop.f32.mrf.mxu0  ;;  %v1482_v48 = vld [vmem:[#allocation3 + $0xb0] sm:$0xff] }
 0x285   : > { %v1713_v0 = vadd.f32 %v1654_v35, %v1482_v48  ;;  %v1757_v48 = vld [vmem:[#allocation3 + $0x20] sm:$0xff] }
 0x286   : > { %v1662_v44 = vpop.f32.mrf.mxu0  ;;  %v1480_v49 = vld [vmem:[#allocation3 + $0xa0] sm:$0xff] }
 0x287   : > { %1743 = vst.msk [vmem:[#allocation3 + $0xb0] sm:$0xff] %vm1429_vm11, %v1713_v0  ;;  %v1711_v51 = vadd.f32 %v1646_v22, %v1480_v49  ;;  %v1753_v22 = vld [vmem:[#allocation3] sm:$0xff] }
 0x288   : > { %v2663_v52 = vpop.f32.mrf.mxu0  ;;  %v1483_v50 = vld [vmem:[#allocation3 + $0xb8] sm:$0xff] }
 0x289   : > { %1741 = vst.msk [vmem:[#allocation3 + $0xa0] sm:$0xff] %vm1429_vm11, %v1711_v51  ;;  %v1714_v53 = vadd.f32 %v1657_v40, %v1483_v50  ;;  %v1758_v52 = vld [vmem:[#allocation3 + $0x28] sm:$0xff] }
 0x28a   : > { %v1665_v4 = vpop.f32.mrf.mxu0  ;;  %v1481_v55 = vld [vmem:[#allocation3 + $0xa8] sm:$0xff] }
 0x28b   : > { %1744 = vst.msk [vmem:[#allocation3 + $0xb8] sm:$0xff] %vm1429_vm11, %v1714_v53  ;;  %v1712_v56 = vadd.f32 %v1649_v3, %v1481_v55 }
 0x28c   : > { %v2664_v37 = vpop.f32.mrf.mxu0  ;;  %v2599_v54 = vpop.f32.mrf.mxu1 }
 0x28d   : > { %1742 = vst.msk [vmem:[#allocation3 + $0xa8] sm:$0xff] %vm1429_vm11, %v1712_v56  ;;  %1456 = vst.msk [vmem:[#allocation3 + $0xd0] sm:$0xff] %vm1429_vm11, %v2599_v54  ;;  %v1759_v56 = vld [vmem:[#allocation3 + $0x30] sm:$0xff] }
 0x28e   : > { %v1670_v58 = vpop.f32.mrf.mxu0  ;;  %v1398_v47 = vpop.f32.mrf.mxu1 }
 0x28f   : > { %1454 = vst.msk [vmem:[#allocation3 + $0xc0] sm:$0xff] %vm1429_vm11, %v1398_v47 }
 0x290   : > { %v2667_v7 = vpop.f32.mrf.mxu0  ;;  %v2600_v59 = vpop.f32.mrf.mxu1 }
 0x291   : > { %1457 = vst.msk [vmem:[#allocation3 + $0xd8] sm:$0xff] %vm1429_vm11, %v2600_v59  ;;  %v1760_v7 = vld [vmem:[#allocation3 + $0x38] sm:$0xff] }
 0x292   : > { %v1673_v63 = vpop.f32.mrf.mxu0  ;;  %v1401_v9 = vpop.f32.mrf.mxu1 }
 0x293   : > { %1455 = vst.msk [vmem:[#allocation3 + $0xc8] sm:$0xff] %vm1429_vm11, %v1401_v9 }
 0x294   : > { %v2668_v45 = vpop.f32.mrf.mxu0  ;;  %v1486_v1 = vld [vmem:[#allocation3 + $0xd0] sm:$0xff] }
 0x295   : > { %v1717_v12 = vadd.f32 %v1670_v58, %v1486_v1  ;;  %v1761_v1 = vld [vmem:[#allocation3 + $0x40] sm:$0xff] }
 0x296   : > { %v1678_v31 = vpop.f32.mrf.mxu0  ;;  %v1484_v32 = vld [vmem:[#allocation3 + $0xc0] sm:$0xff] }
 0x297   : > { %1747 = vst.msk [vmem:[#allocation3 + $0xd0] sm:$0xff] %vm1429_vm11, %v1717_v12  ;;  %v1715_v19 = vadd.f32 %v1662_v44, %v1484_v32 }
 0x298   : > { %v2671_v26 = vpop.f32.mrf.mxu0  ;;  %v1487_v34 = vld [vmem:[#allocation3 + $0xd8] sm:$0xff] }
 0x299   : > { %1745 = vst.msk [vmem:[#allocation3 + $0xc0] sm:$0xff] %vm1429_vm11, %v1715_v19  ;;  %v1718_v11 = vadd.f32 %v1673_v63, %v1487_v34  ;;  %v1762_v26 = vld [vmem:[#allocation3 + $0x48] sm:$0xff] }
 0x29a   : > { %v1681_v14 = vpop.f32.mrf.mxu0  ;;  %v1485_v13 = vld [vmem:[#allocation3 + $0xc8] sm:$0xff]  ;;  %v2603_v15 = vpop.f32.mrf.mxu1 }
 0x29b   : > { %1748 = vst.msk [vmem:[#allocation3 + $0xd8] sm:$0xff] %vm1429_vm11, %v1718_v11  ;;  %v1716_v57 = vadd.f32 %v1665_v4, %v1485_v13  ;;  %1460 = vst.msk [vmem:[#allocation3 + $0xf0] sm:$0xff] %vm1429_vm11, %v2603_v15 }
 0x29c   : > { %v2672_v16 = vpop.f32.mrf.mxu0  ;;  %v1414_v43 = vpop.f32.mrf.mxu1 }
 0x29d   : > { %1746 = vst.msk [vmem:[#allocation3 + $0xc8] sm:$0xff] %vm1429_vm11, %v1716_v57  ;;  %1458 = vst.msk [vmem:[#allocation3 + $0xe0] sm:$0xff] %vm1429_vm11, %v1414_v43  ;;  %v1763_v57 = vld [vmem:[#allocation3 + $0x50] sm:$0xff] }
 0x29e   : > { %v1686_v8 = vpop.f32.mrf.mxu0  ;;  %v2604_v46 = vpop.f32.mrf.mxu1 }
 0x29f   : > { %1461 = vst.msk [vmem:[#allocation3 + $0xf8] sm:$0xff] %vm1429_vm11, %v2604_v46  ;;  %v1764_v46 = vld [vmem:[#allocation3 + $0x58] sm:$0xff] }
 0x2a0   : > { %v2675_v10 = vpop.f32.mrf.mxu0  ;;  %v1417_v17 = vpop.f32.mrf.mxu1 }
 0x2a1   : > { %1459 = vst.msk [vmem:[#allocation3 + $0xe8] sm:$0xff] %vm1429_vm11, %v1417_v17 }
 0x2a2   : > { %v1689_v60 = vpop.f32.mrf.mxu0  ;;  %v1490_v20 = vld [vmem:[#allocation3 + $0xf0] sm:$0xff]  ;;  %v1874_v29 = vpop.f32.mrf.mxu1 }
 0x2a3   : > { %v1721_v62 = vadd.f32 %v1686_v8, %v1490_v20  ;;  %v1987_v21 = vadd.f32 %v1874_v29, %v1755_v27 }
 0x2a4   : > { %v2676_v61 = vpop.f32.mrf.mxu0  ;;  %v1488_v18 = vld [vmem:[#allocation3 + $0xe0] sm:$0xff]  ;;  %v2695_v23 = vpop.f32.mrf.mxu1 }
 0x2a5   : > { %v1719_v30 = vadd.f32 %v1678_v31, %v1488_v18  ;;  %1751 = vst.msk [vmem:[#allocation3 + $0xf0] sm:$0xff] %vm1429_vm11, %v1721_v62  ;;  %2017 = vst.msk [vmem:[#allocation3 + $0x10] sm:$0xff] %vm1429_vm11, %v1987_v21  ;;  %v1765_v61 = vld [vmem:[#allocation3 + $0x60] sm:$0xff]  ;;  %v1766_v18 = vld [vmem:[#allocation3 + $0x68] sm:$0xff] }
 0x2a6   : > { %v1866_v24 = vpop.f32.mrf.mxu0  ;;  %v1491_v6 = vld [vmem:[#allocation3 + $0xf8] sm:$0xff]  ;;  %v1877_v28 = vpop.f32.mrf.mxu1 }
 0x2a7   : > { %v1985_v5 = vadd.f32 %v1866_v24, %v1753_v22  ;;  %1749 = vst.msk [vmem:[#allocation3 + $0xe0] sm:$0xff] %vm1429_vm11, %v1719_v30  ;;  %v1722_v33 = vadd.f32 %v1689_v60, %v1491_v6  ;;  %v1988_v39 = vadd.f32 %v1877_v28, %v1756_v2 }
 0x2a8   : > { %v2691_v3 = vpop.f32.mrf.mxu0  ;;  %v1489_v35 = vld [vmem:[#allocation3 + $0xe8] sm:$0xff]  ;;  %v2696_v25 = vpop.f32.mrf.mxu1 }
 0x2a9   : > { %2015 = vst.msk [vmem:[#allocation3] sm:$0xff] %vm1429_vm11, %v1985_v5  ;;  %v1720_v40 = vadd.f32 %v1681_v14, %v1489_v35  ;;  %1752 = vst.msk [vmem:[#allocation3 + $0xf8] sm:$0xff] %vm1429_vm11, %v1722_v33  ;;  %v1767_v5 = vld [vmem:[#allocation3 + $0x70] sm:$0xff]  ;;  %v1768_v33 = vld [vmem:[#allocation3 + $0x78] sm:$0xff] }
 0x2aa   : > { %v1869_v38 = vpop.f32.mrf.mxu0  ;;  %2018 = vst.msk [vmem:[#allocation3 + $0x18] sm:$0xff] %vm1429_vm11, %v1988_v39  ;;  %v1882_v0 = vpop.f32.mrf.mxu1  ;;  %v1769_v25 = vld [vmem:[#allocation3 + $0x80] sm:$0xff] }
 0x2ab   : > { %v1986_v42 = vadd.f32 %v1869_v38, %v1754_v36  ;;  %1750 = vst.msk [vmem:[#allocation3 + $0xe8] sm:$0xff] %vm1429_vm11, %v1720_v40  ;;  %v1989_v44 = vadd.f32 %v1882_v0, %v1757_v48  ;;  %v1770_v0 = vld [vmem:[#allocation3 + $0x88] sm:$0xff] }
 0x2ac   : > { %v2692_v41 = vpop.f32.mrf.mxu0  ;;  %v2699_v49 = vpop.f32.mrf.mxu1  ;;  %v2047_v51 = vld [vmem:[#allocation3 + $0x10] sm:$0xff] }
 0x2ad   : > { %2016 = vst.msk [vmem:[#allocation3 + $0x8] sm:$0xff] %vm1429_vm11, %v1986_v42  ;;  %2019 = vst.msk [vmem:[#allocation3 + $0x20] sm:$0xff] %vm1429_vm11, %v1989_v44  ;;  %2145 = vrot.lane.b32.xlu0 %v2047_v51, %s2805_s16 }
 0x2ae   : > { %v1885_v50 = vpop.f32.mrf.mxu1 }
 0x2af   : > { %v1990_v53 = vadd.f32 %v1885_v50, %v1758_v52 }
 0x2b0   : > { %v2700_v4 = vpop.f32.mrf.mxu1  ;;  %v2045_v52 = vld [vmem:[#allocation3] sm:$0xff] }
 0x2b1   : > { %v2048_v55 = vld [vmem:[#allocation3 + $0x18] sm:$0xff]  ;;  %2020 = vst.msk [vmem:[#allocation3 + $0x28] sm:$0xff] %vm1429_vm11, %v1990_v53  ;;  %v1771_v53 = vld [vmem:[#allocation3 + $0x90] sm:$0xff] }
 0x2b2   : > { %2147 = vrot.lane.b32.xlu1 %v2048_v55, %s2805_s16  ;;  %v1890_v37 = vpop.f32.mrf.mxu1 }
 0x2b3   : > { %v1991_v54 = vadd.f32 %v1890_v37, %v1759_v56 }
 0x2b4   : > { %v2703_v58 = vpop.f32.mrf.mxu1  ;;  %v2049_v47 = vld [vmem:[#allocation3 + $0x20] sm:$0xff]  ;;  %v2046_v37 = vld [vmem:[#allocation3 + $0x8] sm:$0xff] }
 0x2b5   : > { %2021 = vst.msk [vmem:[#allocation3 + $0x30] sm:$0xff] %vm1429_vm11, %v1991_v54  ;;  %2149 = vrot.lane.b32.xlu0 %v2049_v47, %s2805_s16  ;;  %v1772_v58 = vld [vmem:[#allocation3 + $0x98] sm:$0xff] }
 0x2b6   : > { %v1893_v59 = vpop.f32.mrf.mxu1 }
 0x2b7   : > { %v1992_v63 = vadd.f32 %v1893_v59, %v1760_v7 }
 0x2b8   : > { %v2704_v9 = vpop.f32.mrf.mxu1  ;;  %v2050_v45 = vld [vmem:[#allocation3 + $0x28] sm:$0xff] }
 0x2b9   : > { %2022 = vst.msk [vmem:[#allocation3 + $0x38] sm:$0xff] %vm1429_vm11, %v1992_v63  ;;  %2151 = vrot.lane.b32.xlu1 %v2050_v45, %s2805_s16  ;;  %v1773_v9 = vld [vmem:[#allocation3 + $0xa0] sm:$0xff] }
 0x2ba   : > { %v1898_v12 = vpop.f32.mrf.mxu1 }
 0x2bb   : > { %v1993_v31 = vadd.f32 %v1898_v12, %v1761_v1 }
 0x2bc   : > { %v2707_v32 = vpop.f32.mrf.mxu1  ;;  %v2051_v19 = vld [vmem:[#allocation3 + $0x30] sm:$0xff] }
 0x2bd   : > { %2023 = vst.msk [vmem:[#allocation3 + $0x40] sm:$0xff] %vm1429_vm11, %v1993_v31  ;;  %2153 = vrot.lane.b32.xlu0 %v2051_v19, %s2805_s16  ;;  %v1774_v32 = vld [vmem:[#allocation3 + $0xa8] sm:$0xff] }
 0x2be   : > { %v1901_v34 = vpop.f32.mrf.mxu1 }
 0x2bf   : > { %v1994_v11 = vadd.f32 %v1901_v34, %v1762_v26 }
 0x2c0   : > { %v2708_v14 = vpop.f32.mrf.mxu1  ;;  %v2052_v13 = vld [vmem:[#allocation3 + $0x38] sm:$0xff] }
 0x2c1   : > { %2024 = vst.msk [vmem:[#allocation3 + $0x48] sm:$0xff] %vm1429_vm11, %v1994_v11  ;;  %2155 = vrot.lane.b32.xlu1 %v2052_v13, %s2805_s16  ;;  %v1775_v14 = vld [vmem:[#allocation3 + $0xb0] sm:$0xff] }
 0x2c2   : > { %v1906_v15 = vpop.f32.mrf.mxu1 }
 0x2c3   : > { %v1995_v16 = vadd.f32 %v1906_v15, %v1763_v57 }
 0x2c4   : > { %v2711_v43 = vpop.f32.mrf.mxu1  ;;  %v2053_v8 = vld [vmem:[#allocation3 + $0x40] sm:$0xff] }
 0x2c5   : > { %2025 = vst.msk [vmem:[#allocation3 + $0x50] sm:$0xff] %vm1429_vm11, %v1995_v16  ;;  %2157 = vrot.lane.b32.xlu0 %v2053_v8, %s2805_s16  ;;  %v1776_v43 = vld [vmem:[#allocation3 + $0xb8] sm:$0xff] }
 0x2c6   : > { %v1909_v10 = vpop.f32.mrf.mxu1 }
 0x2c7   : > { %v1996_v17 = vadd.f32 %v1909_v10, %v1764_v46 }
 0x2c8   : > { %v2712_v60 = vpop.f32.mrf.mxu1  ;;  %v2054_v20 = vld [vmem:[#allocation3 + $0x48] sm:$0xff] }
 0x2c9   : > { %2026 = vst.msk [vmem:[#allocation3 + $0x58] sm:$0xff] %vm1429_vm11, %v1996_v17  ;;  %2159 = vrot.lane.b32.xlu1 %v2054_v20, %s2805_s16  ;;  %v1777_v60 = vld [vmem:[#allocation3 + $0xc0] sm:$0xff] }
 0x2ca   : > { %v1914_v27 = vpop.f32.mrf.mxu1 }
 0x2cb   : > { %v1997_v29 = vadd.f32 %v1914_v27, %v1765_v61 }
 0x2cc   : > { %v2715_v62 = vpop.f32.mrf.mxu1  ;;  %v2055_v21 = vld [vmem:[#allocation3 + $0x50] sm:$0xff] }
 0x2cd   : > { %2027 = vst.msk [vmem:[#allocation3 + $0x60] sm:$0xff] %vm1429_vm11, %v1997_v29  ;;  %2161 = vrot.lane.b32.xlu0 %v2055_v21, %s2805_s16  ;;  %v1778_v62 = vld [vmem:[#allocation3 + $0xc8] sm:$0xff] }
 0x2ce   : > { %v1917_v22 = vpop.f32.mrf.mxu1 }
 0x2cf   : > { %v1998_v24 = vadd.f32 %v1917_v22, %v1766_v18 }
 0x2d0   : > { %v2716_v23 = vpop.f32.mrf.mxu1  ;;  %v2056_v30 = vld [vmem:[#allocation3 + $0x58] sm:$0xff] }
 0x2d1   : > { %2028 = vst.msk [vmem:[#allocation3 + $0x68] sm:$0xff] %vm1429_vm11, %v1998_v24  ;;  %2163 = vrot.lane.b32.xlu1 %v2056_v30, %s2805_s16  ;;  %v1779_v23 = vld [vmem:[#allocation3 + $0xd0] sm:$0xff] }
 0x2d2   : > { %v1922_v6 = vpop.f32.mrf.mxu1 }
 0x2d3   : > { %v1999_v3 = vadd.f32 %v1922_v6, %v1767_v5 }
 0x2d4   : > { %v2719_v2 = vpop.f32.mrf.mxu1  ;;  %v2057_v28 = vld [vmem:[#allocation3 + $0x60] sm:$0xff] }
 0x2d5   : > { %2029 = vst.msk [vmem:[#allocation3 + $0x70] sm:$0xff] %vm1429_vm11, %v1999_v3  ;;  %2165 = vrot.lane.b32.xlu0 %v2057_v28, %s2805_s16  ;;  %v1780_v2 = vld [vmem:[#allocation3 + $0xd8] sm:$0xff] }
 0x2d6   : > { %v1925_v39 = vpop.f32.mrf.mxu1 }
 0x2d7   : > { %v2000_v35 = vadd.f32 %v1925_v39, %v1768_v33 }
 0x2d8   : > { %v2720_v36 = vpop.f32.mrf.mxu1  ;;  %v2058_v38 = vld [vmem:[#allocation3 + $0x68] sm:$0xff] }
 0x2d9   : > { %2030 = vst.msk [vmem:[#allocation3 + $0x78] sm:$0xff] %vm1429_vm11, %v2000_v35  ;;  %2167 = vrot.lane.b32.xlu1 %v2058_v38, %s2805_s16  ;;  %v1781_v36 = vld [vmem:[#allocation3 + $0xe0] sm:$0xff] }
 0x2da   : > { %v1930_v40 = vpop.f32.mrf.mxu1 }
 0x2db   : > { %v2001_v42 = vadd.f32 %v1930_v40, %v1769_v25 }
 0x2dc   : > { %v2723_v41 = vpop.f32.mrf.mxu1  ;;  %v2059_v48 = vld [vmem:[#allocation3 + $0x70] sm:$0xff] }
 0x2dd   : > { %2031 = vst.msk [vmem:[#allocation3 + $0x80] sm:$0xff] %vm1429_vm11, %v2001_v42  ;;  %2169 = vrot.lane.b32.xlu0 %v2059_v48, %s2805_s16  ;;  %v1782_v41 = vld [vmem:[#allocation3 + $0xe8] sm:$0xff] }
 0x2de   : > { %v1933_v44 = vpop.f32.mrf.mxu1 }
 0x2df   : > { %v2002_v49 = vadd.f32 %v1933_v44, %v1770_v0 }
 0x2e0   : > { %v2724_v51 = vpop.f32.mrf.mxu1  ;;  %v2060_v50 = vld [vmem:[#allocation3 + $0x78] sm:$0xff] }
 0x2e1   : > { %2032 = vst.msk [vmem:[#allocation3 + $0x88] sm:$0xff] %vm1429_vm11, %v2002_v49  ;;  %2141 = vrot.lane.b32.xlu0 %v2045_v52, %s2805_s16  ;;  %2171 = vrot.lane.b32.xlu1 %v2060_v50, %s2805_s16  ;;  %v2075_v52 = vld [vmem:[#allocation3 + $0xf0] sm:$0xff] }
 0x2e2   : > { %v1938_v4 = vpop.f32.mrf.mxu1 }
 0x2e3   : > { %v2003_v55 = vadd.f32 %v1938_v4, %v1771_v53  ;;  %v2076_v53 = vld [vmem:[#allocation3 + $0xf8] sm:$0xff] }
 0x2e4   : > { %v2727_v56 = vpop.f32.mrf.mxu1  ;;  %v2061_v54 = vld [vmem:[#allocation3 + $0x80] sm:$0xff] }
 0x2e5   : > { %2033 = vst.msk [vmem:[#allocation3 + $0x90] sm:$0xff] %vm1429_vm11, %v2003_v55  ;;  %2143 = vrot.lane.b32.xlu1 %v2046_v37, %s2805_s16  ;;  %2173 = vrot.lane.b32.xlu0 %v2061_v54, %s2805_s16 }
 0x2e6   : > { %v1941_v47 = vpop.f32.mrf.mxu1 }
 0x2e7   : > { %v2004_v7 = vadd.f32 %v1941_v47, %v1772_v58 }
 0x2e8   : > { %v2728_v59 = vpop.f32.mrf.mxu1  ;;  %v2062_v63 = vld [vmem:[#allocation3 + $0x88] sm:$0xff] }
 0x2e9   : > { %2034 = vst.msk [vmem:[#allocation3 + $0x98] sm:$0xff] %vm1429_vm11, %v2004_v7  ;;  %2175 = vrot.lane.b32.xlu1 %v2062_v63, %s2805_s16 }
 0x2ea   : > { %v1946_v45 = vpop.f32.mrf.mxu1 }
 0x2eb   : > { %v2005_v1 = vadd.f32 %v1946_v45, %v1773_v9 }
 0x2ec   : > { %v2731_v12 = vpop.f32.mrf.mxu1  ;;  %v2063_v31 = vld [vmem:[#allocation3 + $0x90] sm:$0xff] }
 0x2ed   : > { %2035 = vst.msk [vmem:[#allocation3 + $0xa0] sm:$0xff] %vm1429_vm11, %v2005_v1  ;;  %2177 = vrot.lane.b32.xlu0 %v2063_v31, %s2805_s16 }
 0x2ee   : > { %v1949_v19 = vpop.f32.mrf.mxu1 }
 0x2ef   : > { %v2006_v26 = vadd.f32 %v1949_v19, %v1774_v32 }
 0x2f0   : > { %v2732_v34 = vpop.f32.mrf.mxu1  ;;  %v2064_v11 = vld [vmem:[#allocation3 + $0x98] sm:$0xff] }
 0x2f1   : > { %2036 = vst.msk [vmem:[#allocation3 + $0xa8] sm:$0xff] %vm1429_vm11, %v2006_v26  ;;  %2179 = vrot.lane.b32.xlu1 %v2064_v11, %s2805_s16 }
 0x2f2   : > { %v1954_v13 = vpop.f32.mrf.mxu1 }
 0x2f3   : > { %v2007_v57 = vadd.f32 %v1954_v13, %v1775_v14 }
 0x2f4   : > { %v2735_v15 = vpop.f32.mrf.mxu1  ;;  %v2065_v16 = vld [vmem:[#allocation3 + $0xa0] sm:$0xff] }
 0x2f5   : > { %2037 = vst.msk [vmem:[#allocation3 + $0xb0] sm:$0xff] %vm1429_vm11, %v2007_v57  ;;  %2181 = vrot.lane.b32.xlu0 %v2065_v16, %s2805_s16 }
 0x2f6   : > { %v1957_v8 = vpop.f32.mrf.mxu1 }
 0x2f7   : > { %v2008_v46 = vadd.f32 %v1957_v8, %v1776_v43 }
 0x2f8   : > { %v2736_v10 = vpop.f32.mrf.mxu1  ;;  %v2066_v17 = vld [vmem:[#allocation3 + $0xa8] sm:$0xff] }
 0x2f9   : > { %2038 = vst.msk [vmem:[#allocation3 + $0xb8] sm:$0xff] %vm1429_vm11, %v2008_v46  ;;  %2183 = vrot.lane.b32.xlu1 %v2066_v17, %s2805_s16 }
 0x2fa   : > { %v1962_v20 = vpop.f32.mrf.mxu1 }
 0x2fb   : > { %v2009_v61 = vadd.f32 %v1962_v20, %v1777_v60 }
 0x2fc   : > { %v2739_v27 = vpop.f32.mrf.mxu1  ;;  %v2067_v29 = vld [vmem:[#allocation3 + $0xb0] sm:$0xff] }
 0x2fd   : > { %2039 = vst.msk [vmem:[#allocation3 + $0xc0] sm:$0xff] %vm1429_vm11, %v2009_v61  ;;  %2185 = vrot.lane.b32.xlu0 %v2067_v29, %s2805_s16 }
 0x2fe   : > { %v1965_v21 = vpop.f32.mrf.mxu1 }
 0x2ff   : > { %v2010_v18 = vadd.f32 %v1965_v21, %v1778_v62 }
 0x300   : > { %v2740_v22 = vpop.f32.mrf.mxu1  ;;  %v2068_v24 = vld [vmem:[#allocation3 + $0xb8] sm:$0xff] }
 0x301   : > { %2040 = vst.msk [vmem:[#allocation3 + $0xc8] sm:$0xff] %vm1429_vm11, %v2010_v18  ;;  %2187 = vrot.lane.b32.xlu1 %v2068_v24, %s2805_s16 }
 0x302   : > { %v1970_v30 = vpop.f32.mrf.mxu1 }
 0x303   : > { %v2011_v5 = vadd.f32 %v1970_v30, %v1779_v23 }
 0x304   : > { %v2743_v6 = vpop.f32.mrf.mxu1  ;;  %v2069_v3 = vld [vmem:[#allocation3 + $0xc0] sm:$0xff] }
 0x305   : > { %2041 = vst.msk [vmem:[#allocation3 + $0xd0] sm:$0xff] %vm1429_vm11, %v2011_v5  ;;  %2189 = vrot.lane.b32.xlu0 %v2069_v3, %s2805_s16 }
 0x306   : > { %v1973_v28 = vpop.f32.mrf.mxu1 }
 0x307   : > { %v2012_v33 = vadd.f32 %v1973_v28, %v1780_v2 }
 0x308   : > { %v2744_v39 = vpop.f32.mrf.mxu1  ;;  %v2070_v35 = vld [vmem:[#allocation3 + $0xc8] sm:$0xff] }
 0x309   : > { %2042 = vst.msk [vmem:[#allocation3 + $0xd8] sm:$0xff] %vm1429_vm11, %v2012_v33  ;;  %2191 = vrot.lane.b32.xlu1 %v2070_v35, %s2805_s16 }
 0x30a   : > { %v1978_v38 = vpop.f32.mrf.mxu1 }
 0x30b   : > { %v2013_v25 = vadd.f32 %v1978_v38, %v1781_v36 }
 0x30c   : > { %v2747_v40 = vpop.f32.mrf.mxu1  ;;  %v2071_v42 = vld [vmem:[#allocation3 + $0xd0] sm:$0xff] }
 0x30d   : > { %2043 = vst.msk [vmem:[#allocation3 + $0xe0] sm:$0xff] %vm1429_vm11, %v2013_v25  ;;  %2193 = vrot.lane.b32.xlu0 %v2071_v42, %s2805_s16 }
 0x30e   : > { %v1981_v48 = vpop.f32.mrf.mxu1 }
 0x30f   : > { %v2014_v0 = vadd.f32 %v1981_v48, %v1782_v41 }
 0x310   : > { %v2748_v44 = vpop.f32.mrf.mxu1  ;;  %v2072_v49 = vld [vmem:[#allocation3 + $0xd8] sm:$0xff] }
 0x311   : > { %2044 = vst.msk [vmem:[#allocation3 + $0xe8] sm:$0xff] %vm1429_vm11, %v2014_v0  ;;  %2195 = vrot.lane.b32.xlu1 %v2072_v49, %s2805_s16 }
 0x314   : > { %v2073_v51 = vld [vmem:[#allocation3 + $0xe0] sm:$0xff] }
 0x315   : > { %2197 = vrot.lane.b32.xlu0 %v2073_v51, %s2805_s16 }
 0x318   : > { %v2074_v50 = vld [vmem:[#allocation3 + $0xe8] sm:$0xff] }
 0x319   : > { %2201 = vrot.lane.b32.xlu0 %v2075_v52, %s2805_s16  ;;  %2199 = vrot.lane.b32.xlu1 %v2074_v50, %s2805_s16 }
 0x31d   : > { %2203 = vrot.lane.b32.xlu1 %v2076_v53, %s2805_s16 }
 0x31f   : > { %v2146_v4 = vpop.permute.xlu0 %2145 }
 0x320   : > { %2240 = vst.msk [vmem:[%s2875_s15 + $0x10] sm:$0xff] %vm2237_vm12, %v2146_v4 }
 0x324   : > { %v2148_v55 = vpop.permute.xlu1 %2147 }
 0x325   : > { %2241 = vst.msk [vmem:[%s2875_s15 + $0x18] sm:$0xff] %vm2237_vm12, %v2148_v55 }
 0x327   : > { %v2150_v56 = vpop.permute.xlu0 %2149 }
 0x328   : > { %2242 = vst.msk [vmem:[%s2875_s15 + $0x20] sm:$0xff] %vm2237_vm12, %v2150_v56 }
 0x32b   : > { %v2152_v37 = vpop.permute.xlu1 %2151 }
 0x32c   : > { %2243 = vst.msk [vmem:[%s2875_s15 + $0x28] sm:$0xff] %vm2237_vm12, %v2152_v37 }
 0x32f   : > { %v2154_v54 = vpop.permute.xlu0 %2153 }
 0x330   : > { %2244 = vst.msk [vmem:[%s2875_s15 + $0x30] sm:$0xff] %vm2237_vm12, %v2154_v54 }
 0x333   : > { %v2156_v58 = vpop.permute.xlu1 %2155 }
 0x334   : > { %2245 = vst.msk [vmem:[%s2875_s15 + $0x38] sm:$0xff] %vm2237_vm12, %v2156_v58 }
 0x337   : > { %v2158_v47 = vpop.permute.xlu0 %2157 }
 0x338   : > { %2246 = vst.msk [vmem:[%s2875_s15 + $0x40] sm:$0xff] %vm2237_vm12, %v2158_v47 }
 0x33b   : > { %v2160_v7 = vpop.permute.xlu1 %2159 }
 0x33c   : > { %2247 = vst.msk [vmem:[%s2875_s15 + $0x48] sm:$0xff] %vm2237_vm12, %v2160_v7 }
 0x33f   : > { %v2162_v59 = vpop.permute.xlu0 %2161 }
 0x340   : > { %2248 = vst.msk [vmem:[%s2875_s15 + $0x50] sm:$0xff] %vm2237_vm12, %v2162_v59 }
 0x343   : > { %v2164_v63 = vpop.permute.xlu1 %2163 }
 0x344   : > { %2249 = vst.msk [vmem:[%s2875_s15 + $0x58] sm:$0xff] %vm2237_vm12, %v2164_v63 }
 0x347   : > { %v2166_v9 = vpop.permute.xlu0 %2165 }
 0x348   : > { %2250 = vst.msk [vmem:[%s2875_s15 + $0x60] sm:$0xff] %vm2237_vm12, %v2166_v9 }
 0x34b   : > { %v2168_v45 = vpop.permute.xlu1 %2167 }
 0x34c   : > { %2251 = vst.msk [vmem:[%s2875_s15 + $0x68] sm:$0xff] %vm2237_vm12, %v2168_v45 }
 0x34f   : > { %v2170_v1 = vpop.permute.xlu0 %2169 }
 0x350   : > { %2252 = vst.msk [vmem:[%s2875_s15 + $0x70] sm:$0xff] %vm2237_vm12, %v2170_v1 }
 0x353   : > { %v2142_v12 = vpop.permute.xlu0 %2141  ;;  %v2172_v31 = vpop.permute.xlu1 %2171 }
 0x354   : > { %2238 = vst.msk [vmem:[%s2875_s15] sm:$0xff] %vm2237_vm12, %v2142_v12  ;;  %2253 = vst.msk [vmem:[%s2875_s15 + $0x78] sm:$0xff] %vm2237_vm12, %v2172_v31 }
 0x357   : > { %v2144_v32 = vpop.permute.xlu1 %2143  ;;  %v2174_v19 = vpop.permute.xlu0 %2173 }
 0x358   : > { %2239 = vst.msk [vmem:[%s2875_s15 + $0x8] sm:$0xff] %vm2237_vm12, %v2144_v32  ;;  %2254 = vst.msk [vmem:[%s2875_s15 + $0x80] sm:$0xff] %vm2237_vm12, %v2174_v19 }
 0x35b   : > { %v2176_v26 = vpop.permute.xlu1 %2175 }
 0x35c   : > { %2255 = vst.msk [vmem:[%s2875_s15 + $0x88] sm:$0xff] %vm2237_vm12, %v2176_v26 }
 0x35f   : > { %v2178_v34 = vpop.permute.xlu0 %2177 }
 0x360   : > { %2256 = vst.msk [vmem:[%s2875_s15 + $0x90] sm:$0xff] %vm2237_vm12, %v2178_v34 }
 0x363   : > { %v2180_v11 = vpop.permute.xlu1 %2179 }
 0x364   : > { %2257 = vst.msk [vmem:[%s2875_s15 + $0x98] sm:$0xff] %vm2237_vm12, %v2180_v11 }
 0x367   : > { %v2182_v14 = vpop.permute.xlu0 %2181 }
 0x368   : > { %2258 = vst.msk [vmem:[%s2875_s15 + $0xa0] sm:$0xff] %vm2237_vm12, %v2182_v14 }
 0x36b   : > { %v2184_v13 = vpop.permute.xlu1 %2183 }
 0x36c   : > { %2259 = vst.msk [vmem:[%s2875_s15 + $0xa8] sm:$0xff] %vm2237_vm12, %v2184_v13 }
 0x36f   : > { %v2186_v57 = vpop.permute.xlu0 %2185 }
 0x370   : > { %2260 = vst.msk [vmem:[%s2875_s15 + $0xb0] sm:$0xff] %vm2237_vm12, %v2186_v57 }
 0x373   : > { %v2188_v15 = vpop.permute.xlu1 %2187 }
 0x374   : > { %2261 = vst.msk [vmem:[%s2875_s15 + $0xb8] sm:$0xff] %vm2237_vm12, %v2188_v15 }
 0x377   : > { %v2190_v16 = vpop.permute.xlu0 %2189 }
 0x378   : > { %2262 = vst.msk [vmem:[%s2875_s15 + $0xc0] sm:$0xff] %vm2237_vm12, %v2190_v16 }
 0x37b   : > { %v2192_v43 = vpop.permute.xlu1 %2191 }
 0x37c   : > { %2263 = vst.msk [vmem:[%s2875_s15 + $0xc8] sm:$0xff] %vm2237_vm12, %v2192_v43 }
 0x37f   : > { %v2194_v8 = vpop.permute.xlu0 %2193 }
 0x380   : > { %2264 = vst.msk [vmem:[%s2875_s15 + $0xd0] sm:$0xff] %vm2237_vm12, %v2194_v8 }
 0x383   : > { %v2196_v46 = vpop.permute.xlu1 %2195 }
 0x384   : > { %2265 = vst.msk [vmem:[%s2875_s15 + $0xd8] sm:$0xff] %vm2237_vm12, %v2196_v46 }
 0x387   : > { %v2198_v10 = vpop.permute.xlu0 %2197 }
 0x388   : > { %2266 = vst.msk [vmem:[%s2875_s15 + $0xe0] sm:$0xff] %vm2237_vm12, %v2198_v10 }
 0x38b   : > { %v2202_v17 = vpop.permute.xlu0 %2201  ;;  %v2200_v60 = vpop.permute.xlu1 %2199 }
 0x38c   : > { %2268 = vst.msk [vmem:[%s2875_s15 + $0xf0] sm:$0xff] %vm2237_vm12, %v2202_v17  ;;  %2267 = vst.msk [vmem:[%s2875_s15 + $0xe8] sm:$0xff] %vm2237_vm12, %v2200_v60 }
 0x38f   : > { %v2204_v20 = vpop.permute.xlu1 %2203 }
 0x390   : > { %2269 = vst.msk [vmem:[%s2875_s15 + $0xf8] sm:$0xff] %vm2237_vm12, %v2204_v20 }
 0x391 PF: > { %s17_s24 = sadd.s32 1, %s2799_s24  }
 0x392   : > { %p14_p4 = scmp.ge.s32.totalorder %s17_s24, 4  }
 0x394   :  { %16 = sbr.rel (!%p14_p4) target bundleno = 1 (0x1), region = 80 }

</bundles_post_ra>
